<compile_context>
chip_gen: v7x
topology: tpu7x:2x2x1
jax: 0.10.0
libtpu: 0.0.40
codegen_flags: <defaults>
</compile_context>

<pallas_src>
import functools

import jax
import jax.numpy as jnp
from jax.experimental import pallas as pl
from jax.experimental.pallas import tpu as pltpu

LANE = 128     # TPU vreg lane width (last dim)
SUBLANE = 8    # TPU vreg sublane width (second-to-last dim)


def _round_up(v, m):
    return ((v + m - 1) // m) * m


def moe_kernel(x_ref, wg1_ref, bg1_ref, wg2_ref, bg2_ref,
               w1_ref, b1_ref, w2_ref, b2_ref,
               gumbel_ref, eps_ref, out_ref,
               *, tau, num_experts, hp, mm_dtype):
    """One row-tile of the fused ReparamGaussianMoE forward.

    x_ref       [tn, Dp]                 input rows (zero-padded features)
    wg1/bg1     [Dp, Hp] / [1, Hp]       gate layer 1 (f32)
    wg2/bg2     [Hp, E]  / [1, E]        gate layer 2 (f32)
    w1/b1       [Dp, 2E*Hp] / [1, 2E*Hp] all expert layer-1 weights fused
                                         (mu experts 0..E-1, then logvar experts)
    w2/b2       [2E, Hp, Dp] / [2E, 1, Dp] stacked expert layer-2 weights
    gumbel_ref  [tn, E]                  Gumbel noise for the gate
    eps_ref     [E, tn, Dp]              N(0,1) reparameterization noise
    out_ref     [tn, Dp]
    """
    E = num_experts

    x_f32 = x_ref[...].astype(jnp.float32)
    x_mm = x_ref[...].astype(mm_dtype)          # matmul input dtype (bf16 on v6e/v7x)

    # ---- gate MLP (kept in f32: logit error is amplified by 1/tau below) ----
    hg = jnp.dot(x_f32, wg1_ref[...], preferred_element_type=jnp.float32) + bg1_ref[...]
    hg = jnp.maximum(hg, 0.0)
    logits = jnp.dot(hg, wg2_ref[...], preferred_element_type=jnp.float32) + bg2_ref[...]

    # ---- Gumbel-Softmax (soft, temperature tau) ----
    y = (logits + gumbel_ref[...]) / tau
    y = y - jnp.max(y, axis=-1, keepdims=True)
    p = jnp.exp(y)
    w = p / jnp.sum(p, axis=-1, keepdims=True)                       # [tn, E]
    # Pre-extract gate columns once so the cross-lane broadcasts stay out of the
    # MXU hot loop.
    w_cols = [w[:, e:e + 1] for e in range(E)]                       # each [tn, 1]

    # ---- all 2E expert layer-1 matmuls fused into ONE wide MXU matmul ----
    h_all = jnp.dot(x_mm, w1_ref[...], preferred_element_type=jnp.float32) + b1_ref[...]
    h_all = jnp.maximum(h_all, 0.0).astype(mm_dtype)                 # [tn, 2E*Hp]

    # ---- per-expert layer 2, reparameterized sample, gate-weighted sum ----
    # E is small & static here; for large E switch to lax.fori_loop(..., unroll=k)
    # with a VMEM scratch accumulator to bound vreg live ranges.
    acc = jnp.zeros(out_ref.shape, dtype=jnp.float32)
    for e in range(E):
        hm = h_all[:, e * hp:(e + 1) * hp]                 # lane-aligned static slice
        hl = h_all[:, (E + e) * hp:(E + e + 1) * hp]
        mu = jnp.dot(hm, w2_ref[e], preferred_element_type=jnp.float32) + b2_ref[e]
        lv = jnp.dot(hl, w2_ref[E + e], preferred_element_type=jnp.float32) + b2_ref[E + e]
        sample = mu + eps_ref[e].astype(jnp.float32) * jnp.exp(0.5 * lv)   # [tn, Dp]
        acc = acc + w_cols[e] * sample

    out_ref[...] = acc.astype(out_ref.dtype)


def reparam_moe_forward(x, params, gumbel, eps, *, tau, tile_n=256,
                        matmul_dtype=jnp.bfloat16):
    """Fused ReparamGaussianMoE forward. x: [N, D]; gumbel: [N, E]; eps: [E, N, D]."""
    N, D = x.shape
    E, _, H = params["wmu1"].shape

    Dp = _round_up(D, LANE)
    Hp = _round_up(H, LANE)
    # Row tile: big enough to feed the MXU M dimension, never bigger than the
    # (padded) batch.  On v7x keep Np // tile_n >= 2 when N is large so both
    # TensorCores get work.
    tile_n = _round_up(max(1, min(tile_n, _round_up(N, SUBLANE))), SUBLANE)
    Np = _round_up(N, tile_n)
    grid = (Np // tile_n,)

    f32 = jnp.float32

    def pad2(a, r, c):
        return jnp.pad(a, ((0, r - a.shape[0]), (0, c - a.shape[1])))

    # gate (f32)
    wg1 = pad2(params["wg1"], Dp, Hp).astype(f32)
    bg1 = pad2(params["bg1"], 1, Hp).astype(f32)
    wg2 = pad2(params["wg2"], Hp, E).astype(f32)
    bg2 = params["bg2"].astype(f32)                               # [1, E]

    # expert layer 1: [E, D, H] (mu) ++ [E, D, H] (logvar) -> [Dp, 2E*Hp]
    def pack_l1(w):
        wp = jnp.pad(w, ((0, 0), (0, Dp - D), (0, Hp - H)))
        return jnp.transpose(wp, (1, 0, 2)).reshape(Dp, E * Hp)

    def pack_b1(b):
        return jnp.pad(b, ((0, 0), (0, Hp - H))).reshape(1, E * Hp)

    w1 = jnp.concatenate([pack_l1(params["wmu1"]), pack_l1(params["wlv1"])],
                         axis=1).astype(matmul_dtype)
    b1 = jnp.concatenate([pack_b1(params["bmu1"]), pack_b1(params["blv1"])],
                         axis=1).astype(f32)

    # expert layer 2: stacked [2E, Hp, Dp] (mu experts first, then logvar experts)
    def pack_l2(w):
        return jnp.pad(w, ((0, 0), (0, Hp - H), (0, Dp - D)))

    def pack_b2(b):
        return jnp.pad(b, ((0, 0), (0, Dp - D)))[:, None, :]

    w2 = jnp.concatenate([pack_l2(params["wmu2"]), pack_l2(params["wlv2"])],
                         axis=0).astype(matmul_dtype)
    b2 = jnp.concatenate([pack_b2(params["bmu2"]), pack_b2(params["blv2"])],
                         axis=0).astype(f32)

    # activations / noise (zero padding keeps every padded lane finite)
    x_p = jnp.pad(x, ((0, Np - N), (0, Dp - D)))
    g_p = jnp.pad(gumbel, ((0, Np - N), (0, 0)))
    e_p = jnp.pad(eps, ((0, 0), (0, Np - N), (0, Dp - D)))

    kernel = functools.partial(moe_kernel, tau=float(tau), num_experts=E,
                               hp=Hp, mm_dtype=matmul_dtype)

    def full(shape):
        nd = len(shape)
        return pl.BlockSpec(shape, lambda i, _nd=nd: (0,) * _nd)

    in_specs = [
        pl.BlockSpec((tile_n, Dp), lambda i: (i, 0)),          # x
        full((Dp, Hp)), full((1, Hp)),                         # gate layer 1
        full((Hp, E)), full((1, E)),                           # gate layer 2
        full((Dp, 2 * E * Hp)), full((1, 2 * E * Hp)),         # fused expert layer 1
        full((2 * E, Hp, Dp)), full((2 * E, 1, Dp)),           # stacked expert layer 2
        pl.BlockSpec((tile_n, E), lambda i: (i, 0)),           # gumbel noise
        pl.BlockSpec((E, tile_n, Dp), lambda i: (0, i, 0)),    # eps noise
    ]
    out_specs = pl.BlockSpec((tile_n, Dp), lambda i: (i, 0))

    # NOTE: for production-size D/H, re-budget the resident (double-buffered)
    # weight blocks against 64 MiB VMEM on v7x and, if needed, add a grid axis over
    # H / experts plus an explicit vmem_limit_bytes in CompilerParams.  At these
    # shapes the default scoped VMEM limit is ample.
    out_p = pl.pallas_call(
        kernel,
        grid=grid,
        in_specs=in_specs,
        out_specs=out_specs,
        out_shape=jax.ShapeDtypeStruct((Np, Dp), x.dtype),
        compiler_params=pltpu.CompilerParams(dimension_semantics=("parallel",)),
    )(x_p, wg1, bg1, wg2, bg2, w1, b1, w2, b2, g_p, e_p)

    return out_p[:N, :D]


def init_params(key, input_dim, hidden_dim, num_experts):
    """Deterministic init mimicking torch.nn.Linear default (uniform +/- 1/sqrt(fan_in))."""
    def lin(k, fan_in, fan_out):
        kw, kb = jax.random.split(k)
        bound = 1.0 / jnp.sqrt(fan_in)
        w = jax.random.uniform(kw, (fan_in, fan_out), jnp.float32, -bound, bound)
        b = jax.random.uniform(kb, (fan_out,), jnp.float32, -bound, bound)
        return w, b

    D, H, E = input_dim, hidden_dim, num_experts
    keys = jax.random.split(key, 2 + 4 * E)
    wg1, bg1 = lin(keys[0], D, H)
    wg2, bg2 = lin(keys[1], H, E)

    mu1 = [lin(keys[2 + e], D, H) for e in range(E)]
    mu2 = [lin(keys[2 + E + e], H, D) for e in range(E)]
    lv1 = [lin(keys[2 + 2 * E + e], D, H) for e in range(E)]
    lv2 = [lin(keys[2 + 3 * E + e], H, D) for e in range(E)]

    return {
        "wg1": wg1, "bg1": bg1.reshape(1, H),
        "wg2": wg2, "bg2": bg2.reshape(1, E),
        "wmu1": jnp.stack([w for w, _ in mu1]), "bmu1": jnp.stack([b for _, b in mu1]),
        "wmu2": jnp.stack([w for w, _ in mu2]), "bmu2": jnp.stack([b for _, b in mu2]),
        "wlv1": jnp.stack([w for w, _ in lv1]), "blv1": jnp.stack([b for _, b in lv1]),
        "wlv2": jnp.stack([w for w, _ in lv2]), "blv2": jnp.stack([b for _, b in lv2]),
    }


def reference_forward(x, params, gumbel, eps, tau):
    """Pure-JAX f32 reference matching the PyTorch module semantics."""
    E = params["wmu1"].shape[0]
    h = jax.nn.relu(x @ params["wg1"] + params["bg1"])
    logits = h @ params["wg2"] + params["bg2"]
    w = jax.nn.softmax((logits + gumbel) / tau, axis=-1)                 # [N, E]

    def expert(w1, b1, w2, b2):
        return jax.nn.relu(x @ w1 + b1) @ w2 + b2

    mus = jnp.stack([expert(params["wmu1"][e], params["bmu1"][e],
                            params["wmu2"][e], params["bmu2"][e]) for e in range(E)], axis=1)
    lvs = jnp.stack([expert(params["wlv1"][e], params["blv1"][e],
                            params["wlv2"][e], params["blv2"][e]) for e in range(E)], axis=1)
    samples = mus + jnp.transpose(eps, (1, 0, 2)) * jnp.exp(0.5 * lvs)   # [N, E, D]
    return jnp.sum(w[..., None] * samples, axis=1)                       # [N, D]


if __name__ == "__main__":
    D, H, E = 32, 64, 4
    tau = 0.1

    root = jax.random.PRNGKey(0)
    k_params = jax.random.fold_in(root, 0)
    params = init_params(k_params, D, H, E)

    # bf16 expert matmuls (f32 accumulation) vs the pure-f32 reference -> loose tol.
    RTOL = ATOL = 5e-2

    # Two batch sizes: tiny (single grid step) and one exercising row padding +
    # a multi-step "parallel" grid.
    for case_idx, N in enumerate((16, 300)):
        kx = jax.random.fold_in(root, 10 + case_idx)
        kg = jax.random.fold_in(root, 20 + case_idx)
        ke = jax.random.fold_in(root, 30 + case_idx)

        x = jax.random.normal(kx, (N, D), jnp.float32)
        gumbel = jax.random.gumbel(kg, (N, E), jnp.float32)   # gate's Gumbel noise
        eps = jax.random.normal(ke, (E, N, D), jnp.float32)   # reparameterization noise

        out = reparam_moe_forward(x, params, gumbel, eps, tau=tau,
                                  tile_n=128, matmul_dtype=jnp.bfloat16)
        out = jax.block_until_ready(out)

        ref = reference_forward(x, params, gumbel, eps, tau)
        assert out.shape == (N, D)
        max_diff = float(jnp.max(jnp.abs(out - ref)))
        assert jnp.allclose(out, ref, rtol=RTOL, atol=ATOL), (
            f"Pallas output mismatch vs reference (N={N}), max|diff|={max_diff}")

    print("KERNEL_OK")
</pallas_src>

<mosaic_0001>
module attributes {stable_mosaic.version = 11 : i64} {
  func.func @moe_kernel(%arg0: i32, %arg1: memref<16x128xf32, #tpu.memory_space<vmem>>, %arg2: memref<128x128xf32, #tpu.memory_space<vmem>>, %arg3: memref<1x128xf32, #tpu.memory_space<vmem>>, %arg4: memref<128x4xf32, #tpu.memory_space<vmem>>, %arg5: memref<1x4xf32, #tpu.memory_space<vmem>>, %arg6: memref<128x1024xbf16, #tpu.memory_space<vmem>>, %arg7: memref<1x1024xf32, #tpu.memory_space<vmem>>, %arg8: memref<8x128x128xbf16, #tpu.memory_space<vmem>>, %arg9: memref<8x1x128xf32, #tpu.memory_space<vmem>>, %arg10: memref<16x4xf32, #tpu.memory_space<vmem>>, %arg11: memref<4x16x128xf32, #tpu.memory_space<vmem>>, %arg12: memref<16x128xf32, #tpu.memory_space<vmem>>) attributes {dimension_semantics = [#tpu.dimension_semantics<parallel>], iteration_bounds = array<i64: 1>, scalar_prefetch = 0 : i64, scratch_operands = 0 : i64, tpu.core_type = #tpu.core_type<tc>, window_params = [{transform_indices = @transform_0, window_bounds = array<i64: 16, 128>}, {pipeline_mode = #tpu.pipeline_mode<synchronous>, transform_indices = @transform_1, window_bounds = array<i64: 128, 128>}, {pipeline_mode = #tpu.pipeline_mode<synchronous>, transform_indices = @transform_2, window_bounds = array<i64: 1, 128>}, {pipeline_mode = #tpu.pipeline_mode<synchronous>, transform_indices = @transform_3, window_bounds = array<i64: 128, 4>}, {pipeline_mode = #tpu.pipeline_mode<synchronous>, transform_indices = @transform_4, window_bounds = array<i64: 1, 4>}, {pipeline_mode = #tpu.pipeline_mode<synchronous>, transform_indices = @transform_5, window_bounds = array<i64: 128, 1024>}, {pipeline_mode = #tpu.pipeline_mode<synchronous>, transform_indices = @transform_6, window_bounds = array<i64: 1, 1024>}, {pipeline_mode = #tpu.pipeline_mode<synchronous>, transform_indices = @transform_7, window_bounds = array<i64: 8, 128, 128>}, {pipeline_mode = #tpu.pipeline_mode<synchronous>, transform_indices = @transform_8, window_bounds = array<i64: 8, 1, 128>}, {transform_indices = @transform_9, window_bounds = array<i64: 16, 4>}, {transform_indices = @transform_10, window_bounds = array<i64: 4, 16, 128>}, {transform_indices = @transform_11, window_bounds = array<i64: 16, 128>}]} {
    %c0 = arith.constant 0 : index
    %c0_0 = arith.constant 0 : index
    %0 = vector.load %arg1[%c0, %c0_0] : memref<16x128xf32, #tpu.memory_space<vmem>>, vector<16x128xf32>
    %c0_1 = arith.constant 0 : index
    %c0_2 = arith.constant 0 : index
    %1 = vector.load %arg1[%c0_1, %c0_2] : memref<16x128xf32, #tpu.memory_space<vmem>>, vector<16x128xf32>
    %2 = arith.truncf %1 : vector<16x128xf32> to vector<16x128xbf16>
    %c0_3 = arith.constant 0 : index
    %c0_4 = arith.constant 0 : index
    %3 = vector.load %arg2[%c0_3, %c0_4] : memref<128x128xf32, #tpu.memory_space<vmem>>, vector<128x128xf32>
    %cst = arith.constant dense<0.000000e+00> : vector<16x128xf32>
    %4 = tpu.matmul %0, %3, %cst {dimension_numbers = #tpu.dot_dimension_numbers<[1], [0], [0], [1], [0, 0, 1, 1], [], []>} : vector<16x128xf32>, vector<128x128xf32>, vector<16x128xf32> -> vector<16x128xf32>
    %c0_5 = arith.constant 0 : index
    %c0_6 = arith.constant 0 : index
    %5 = vector.load %arg3[%c0_5, %c0_6] : memref<1x128xf32, #tpu.memory_space<vmem>>, vector<1x128xf32>
    %6 = vector.broadcast %5 : vector<1x128xf32> to vector<16x128xf32>
    %7 = arith.addf %4, %6 : vector<16x128xf32>
    %cst_7 = arith.constant 0.000000e+00 : f32
    %8 = vector.broadcast %cst_7 : f32 to vector<16x128xf32>
    %9 = arith.maximumf %7, %8 : vector<16x128xf32>
    %c0_8 = arith.constant 0 : index
    %c0_9 = arith.constant 0 : index
    %10 = vector.load %arg4[%c0_8, %c0_9] : memref<128x4xf32, #tpu.memory_space<vmem>>, vector<128x4xf32>
    %cst_10 = arith.constant dense<0.000000e+00> : vector<16x4xf32>
    %11 = tpu.matmul %9, %10, %cst_10 {dimension_numbers = #tpu.dot_dimension_numbers<[1], [0], [0], [1], [0, 0, 1, 1], [], []>} : vector<16x128xf32>, vector<128x4xf32>, vector<16x4xf32> -> vector<16x4xf32>
    %c0_11 = arith.constant 0 : index
    %c0_12 = arith.constant 0 : index
    %12 = vector.load %arg5[%c0_11, %c0_12] : memref<1x4xf32, #tpu.memory_space<vmem>>, vector<1x4xf32>
    %13 = vector.broadcast %12 : vector<1x4xf32> to vector<16x4xf32>
    %14 = arith.addf %11, %13 : vector<16x4xf32>
    %c0_13 = arith.constant 0 : index
    %c0_14 = arith.constant 0 : index
    %15 = vector.load %arg10[%c0_13, %c0_14] : memref<16x4xf32, #tpu.memory_space<vmem>>, vector<16x4xf32>
    %16 = arith.addf %14, %15 : vector<16x4xf32>
    %cst_15 = arith.constant 1.000000e-01 : f32
    %17 = vector.broadcast %cst_15 : f32 to vector<16x4xf32>
    %18 = arith.divf %16, %17 : vector<16x4xf32>
    %cst_16 = arith.constant dense<0xFF800000> : vector<16xf32>
    %19 = vector.multi_reduction <maximumf>, %18, %cst_16 [1] : vector<16x4xf32> to vector<16xf32>
    %20 = vector.shape_cast %19 : vector<16xf32> to vector<16x1xf32>
    %21 = vector.broadcast %20 : vector<16x1xf32> to vector<16x4xf32>
    %22 = arith.subf %18, %21 : vector<16x4xf32>
    %23 = math.exp %22 : vector<16x4xf32>
    %cst_17 = arith.constant dense<0.000000e+00> : vector<16xf32>
    %24 = vector.multi_reduction <add>, %23, %cst_17 [1] : vector<16x4xf32> to vector<16xf32>
    %25 = vector.shape_cast %24 : vector<16xf32> to vector<16x1xf32>
    %26 = vector.broadcast %25 : vector<16x1xf32> to vector<16x4xf32>
    %27 = arith.divf %23, %26 : vector<16x4xf32>
    %28 = vector.extract_strided_slice %27 {offsets = [0, 0], sizes = [16, 1], strides = [1, 1]} : vector<16x4xf32> to vector<16x1xf32>
    %29 = vector.extract_strided_slice %27 {offsets = [0, 1], sizes = [16, 1], strides = [1, 1]} : vector<16x4xf32> to vector<16x1xf32>
    %30 = vector.extract_strided_slice %27 {offsets = [0, 2], sizes = [16, 1], strides = [1, 1]} : vector<16x4xf32> to vector<16x1xf32>
    %31 = vector.extract_strided_slice %27 {offsets = [0, 3], sizes = [16, 1], strides = [1, 1]} : vector<16x4xf32> to vector<16x1xf32>
    %c0_18 = arith.constant 0 : index
    %c0_19 = arith.constant 0 : index
    %32 = vector.load %arg6[%c0_18, %c0_19] : memref<128x1024xbf16, #tpu.memory_space<vmem>>, vector<128x1024xbf16>
    %cst_20 = arith.constant dense<0.000000e+00> : vector<16x1024xf32>
    %33 = tpu.matmul %2, %32, %cst_20 {dimension_numbers = #tpu.dot_dimension_numbers<[1], [0], [0], [1], [0, 0, 1, 1], [], []>} : vector<16x128xbf16>, vector<128x1024xbf16>, vector<16x1024xf32> -> vector<16x1024xf32>
    %c0_21 = arith.constant 0 : index
    %c0_22 = arith.constant 0 : index
    %34 = vector.load %arg7[%c0_21, %c0_22] : memref<1x1024xf32, #tpu.memory_space<vmem>>, vector<1x1024xf32>
    %35 = vector.broadcast %34 : vector<1x1024xf32> to vector<16x1024xf32>
    %36 = arith.addf %33, %35 : vector<16x1024xf32>
    %cst_23 = arith.constant 0.000000e+00 : f32
    %37 = vector.broadcast %cst_23 : f32 to vector<16x1024xf32>
    %38 = arith.maximumf %36, %37 : vector<16x1024xf32>
    %39 = arith.truncf %38 : vector<16x1024xf32> to vector<16x1024xbf16>
    %cst_24 = arith.constant 0.000000e+00 : f32
    %40 = vector.broadcast %cst_24 : f32 to vector<16x128xf32>
    %41 = vector.extract_strided_slice %39 {offsets = [0, 0], sizes = [16, 128], strides = [1, 1]} : vector<16x1024xbf16> to vector<16x128xbf16>
    %42 = vector.extract_strided_slice %39 {offsets = [0, 512], sizes = [16, 128], strides = [1, 1]} : vector<16x1024xbf16> to vector<16x128xbf16>
    %c0_25 = arith.constant 0 : index
    %c0_26 = arith.constant 0 : index
    %c0_27 = arith.constant 0 : index
    %43 = vector.load %arg8[%c0_25, %c0_26, %c0_27] : memref<8x128x128xbf16, #tpu.memory_space<vmem>>, vector<1x128x128xbf16>
    %44 = vector.shape_cast %43 : vector<1x128x128xbf16> to vector<128x128xbf16>
    %cst_28 = arith.constant dense<0.000000e+00> : vector<16x128xf32>
    %45 = tpu.matmul %41, %44, %cst_28 {dimension_numbers = #tpu.dot_dimension_numbers<[1], [0], [0], [1], [0, 0, 1, 1], [], []>} : vector<16x128xbf16>, vector<128x128xbf16>, vector<16x128xf32> -> vector<16x128xf32>
    %c0_29 = arith.constant 0 : index
    %c0_30 = arith.constant 0 : index
    %c0_31 = arith.constant 0 : index
    %46 = vector.load %arg9[%c0_29, %c0_30, %c0_31] : memref<8x1x128xf32, #tpu.memory_space<vmem>>, vector<1x1x128xf32>
    %47 = vector.shape_cast %46 : vector<1x1x128xf32> to vector<1x128xf32>
    %48 = vector.broadcast %47 : vector<1x128xf32> to vector<16x128xf32>
    %49 = arith.addf %45, %48 : vector<16x128xf32>
    %c4 = arith.constant 4 : index
    %c0_32 = arith.constant 0 : index
    %c0_33 = arith.constant 0 : index
    %50 = vector.load %arg8[%c4, %c0_32, %c0_33] : memref<8x128x128xbf16, #tpu.memory_space<vmem>>, vector<1x128x128xbf16>
    %51 = vector.shape_cast %50 : vector<1x128x128xbf16> to vector<128x128xbf16>
    %cst_34 = arith.constant dense<0.000000e+00> : vector<16x128xf32>
    %52 = tpu.matmul %42, %51, %cst_34 {dimension_numbers = #tpu.dot_dimension_numbers<[1], [0], [0], [1], [0, 0, 1, 1], [], []>} : vector<16x128xbf16>, vector<128x128xbf16>, vector<16x128xf32> -> vector<16x128xf32>
    %c4_35 = arith.constant 4 : index
    %c0_36 = arith.constant 0 : index
    %c0_37 = arith.constant 0 : index
    %53 = vector.load %arg9[%c4_35, %c0_36, %c0_37] : memref<8x1x128xf32, #tpu.memory_space<vmem>>, vector<1x1x128xf32>
    %54 = vector.shape_cast %53 : vector<1x1x128xf32> to vector<1x128xf32>
    %55 = vector.broadcast %54 : vector<1x128xf32> to vector<16x128xf32>
    %56 = arith.addf %52, %55 : vector<16x128xf32>
    %c0_38 = arith.constant 0 : index
    %c0_39 = arith.constant 0 : index
    %c0_40 = arith.constant 0 : index
    %57 = vector.load %arg11[%c0_38, %c0_39, %c0_40] : memref<4x16x128xf32, #tpu.memory_space<vmem>>, vector<1x16x128xf32>
    %58 = vector.shape_cast %57 : vector<1x16x128xf32> to vector<16x128xf32>
    %cst_41 = arith.constant 5.000000e-01 : f32
    %59 = vector.broadcast %cst_41 : f32 to vector<16x128xf32>
    %60 = arith.mulf %59, %56 : vector<16x128xf32>
    %61 = math.exp %60 : vector<16x128xf32>
    %62 = arith.mulf %58, %61 : vector<16x128xf32>
    %63 = arith.addf %49, %62 : vector<16x128xf32>
    %64 = vector.broadcast %28 : vector<16x1xf32> to vector<16x128xf32>
    %65 = arith.mulf %64, %63 : vector<16x128xf32>
    %66 = arith.addf %40, %65 : vector<16x128xf32>
    %67 = vector.extract_strided_slice %39 {offsets = [0, 128], sizes = [16, 128], strides = [1, 1]} : vector<16x1024xbf16> to vector<16x128xbf16>
    %68 = vector.extract_strided_slice %39 {offsets = [0, 640], sizes = [16, 128], strides = [1, 1]} : vector<16x1024xbf16> to vector<16x128xbf16>
    %c1 = arith.constant 1 : index
    %c0_42 = arith.constant 0 : index
    %c0_43 = arith.constant 0 : index
    %69 = vector.load %arg8[%c1, %c0_42, %c0_43] : memref<8x128x128xbf16, #tpu.memory_space<vmem>>, vector<1x128x128xbf16>
    %70 = vector.shape_cast %69 : vector<1x128x128xbf16> to vector<128x128xbf16>
    %cst_44 = arith.constant dense<0.000000e+00> : vector<16x128xf32>
    %71 = tpu.matmul %67, %70, %cst_44 {dimension_numbers = #tpu.dot_dimension_numbers<[1], [0], [0], [1], [0, 0, 1, 1], [], []>} : vector<16x128xbf16>, vector<128x128xbf16>, vector<16x128xf32> -> vector<16x128xf32>
    %c1_45 = arith.constant 1 : index
    %c0_46 = arith.constant 0 : index
    %c0_47 = arith.constant 0 : index
    %72 = vector.load %arg9[%c1_45, %c0_46, %c0_47] : memref<8x1x128xf32, #tpu.memory_space<vmem>>, vector<1x1x128xf32>
    %73 = vector.shape_cast %72 : vector<1x1x128xf32> to vector<1x128xf32>
    %74 = vector.broadcast %73 : vector<1x128xf32> to vector<16x128xf32>
    %75 = arith.addf %71, %74 : vector<16x128xf32>
    %c5 = arith.constant 5 : index
    %c0_48 = arith.constant 0 : index
    %c0_49 = arith.constant 0 : index
    %76 = vector.load %arg8[%c5, %c0_48, %c0_49] : memref<8x128x128xbf16, #tpu.memory_space<vmem>>, vector<1x128x128xbf16>
    %77 = vector.shape_cast %76 : vector<1x128x128xbf16> to vector<128x128xbf16>
    %cst_50 = arith.constant dense<0.000000e+00> : vector<16x128xf32>
    %78 = tpu.matmul %68, %77, %cst_50 {dimension_numbers = #tpu.dot_dimension_numbers<[1], [0], [0], [1], [0, 0, 1, 1], [], []>} : vector<16x128xbf16>, vector<128x128xbf16>, vector<16x128xf32> -> vector<16x128xf32>
    %c5_51 = arith.constant 5 : index
    %c0_52 = arith.constant 0 : index
    %c0_53 = arith.constant 0 : index
    %79 = vector.load %arg9[%c5_51, %c0_52, %c0_53] : memref<8x1x128xf32, #tpu.memory_space<vmem>>, vector<1x1x128xf32>
    %80 = vector.shape_cast %79 : vector<1x1x128xf32> to vector<1x128xf32>
    %81 = vector.broadcast %80 : vector<1x128xf32> to vector<16x128xf32>
    %82 = arith.addf %78, %81 : vector<16x128xf32>
    %c1_54 = arith.constant 1 : index
    %c0_55 = arith.constant 0 : index
    %c0_56 = arith.constant 0 : index
    %83 = vector.load %arg11[%c1_54, %c0_55, %c0_56] : memref<4x16x128xf32, #tpu.memory_space<vmem>>, vector<1x16x128xf32>
    %84 = vector.shape_cast %83 : vector<1x16x128xf32> to vector<16x128xf32>
    %cst_57 = arith.constant 5.000000e-01 : f32
    %85 = vector.broadcast %cst_57 : f32 to vector<16x128xf32>
    %86 = arith.mulf %85, %82 : vector<16x128xf32>
    %87 = math.exp %86 : vector<16x128xf32>
    %88 = arith.mulf %84, %87 : vector<16x128xf32>
    %89 = arith.addf %75, %88 : vector<16x128xf32>
    %90 = vector.broadcast %29 : vector<16x1xf32> to vector<16x128xf32>
    %91 = arith.mulf %90, %89 : vector<16x128xf32>
    %92 = arith.addf %66, %91 : vector<16x128xf32>
    %93 = vector.extract_strided_slice %39 {offsets = [0, 256], sizes = [16, 128], strides = [1, 1]} : vector<16x1024xbf16> to vector<16x128xbf16>
    %94 = vector.extract_strided_slice %39 {offsets = [0, 768], sizes = [16, 128], strides = [1, 1]} : vector<16x1024xbf16> to vector<16x128xbf16>
    %c2 = arith.constant 2 : index
    %c0_58 = arith.constant 0 : index
    %c0_59 = arith.constant 0 : index
    %95 = vector.load %arg8[%c2, %c0_58, %c0_59] : memref<8x128x128xbf16, #tpu.memory_space<vmem>>, vector<1x128x128xbf16>
    %96 = vector.shape_cast %95 : vector<1x128x128xbf16> to vector<128x128xbf16>
    %cst_60 = arith.constant dense<0.000000e+00> : vector<16x128xf32>
    %97 = tpu.matmul %93, %96, %cst_60 {dimension_numbers = #tpu.dot_dimension_numbers<[1], [0], [0], [1], [0, 0, 1, 1], [], []>} : vector<16x128xbf16>, vector<128x128xbf16>, vector<16x128xf32> -> vector<16x128xf32>
    %c2_61 = arith.constant 2 : index
    %c0_62 = arith.constant 0 : index
    %c0_63 = arith.constant 0 : index
    %98 = vector.load %arg9[%c2_61, %c0_62, %c0_63] : memref<8x1x128xf32, #tpu.memory_space<vmem>>, vector<1x1x128xf32>
    %99 = vector.shape_cast %98 : vector<1x1x128xf32> to vector<1x128xf32>
    %100 = vector.broadcast %99 : vector<1x128xf32> to vector<16x128xf32>
    %101 = arith.addf %97, %100 : vector<16x128xf32>
    %c6 = arith.constant 6 : index
    %c0_64 = arith.constant 0 : index
    %c0_65 = arith.constant 0 : index
    %102 = vector.load %arg8[%c6, %c0_64, %c0_65] : memref<8x128x128xbf16, #tpu.memory_space<vmem>>, vector<1x128x128xbf16>
    %103 = vector.shape_cast %102 : vector<1x128x128xbf16> to vector<128x128xbf16>
    %cst_66 = arith.constant dense<0.000000e+00> : vector<16x128xf32>
    %104 = tpu.matmul %94, %103, %cst_66 {dimension_numbers = #tpu.dot_dimension_numbers<[1], [0], [0], [1], [0, 0, 1, 1], [], []>} : vector<16x128xbf16>, vector<128x128xbf16>, vector<16x128xf32> -> vector<16x128xf32>
    %c6_67 = arith.constant 6 : index
    %c0_68 = arith.constant 0 : index
    %c0_69 = arith.constant 0 : index
    %105 = vector.load %arg9[%c6_67, %c0_68, %c0_69] : memref<8x1x128xf32, #tpu.memory_space<vmem>>, vector<1x1x128xf32>
    %106 = vector.shape_cast %105 : vector<1x1x128xf32> to vector<1x128xf32>
    %107 = vector.broadcast %106 : vector<1x128xf32> to vector<16x128xf32>
    %108 = arith.addf %104, %107 : vector<16x128xf32>
    %c2_70 = arith.constant 2 : index
    %c0_71 = arith.constant 0 : index
    %c0_72 = arith.constant 0 : index
    %109 = vector.load %arg11[%c2_70, %c0_71, %c0_72] : memref<4x16x128xf32, #tpu.memory_space<vmem>>, vector<1x16x128xf32>
    %110 = vector.shape_cast %109 : vector<1x16x128xf32> to vector<16x128xf32>
    %cst_73 = arith.constant 5.000000e-01 : f32
    %111 = vector.broadcast %cst_73 : f32 to vector<16x128xf32>
    %112 = arith.mulf %111, %108 : vector<16x128xf32>
    %113 = math.exp %112 : vector<16x128xf32>
    %114 = arith.mulf %110, %113 : vector<16x128xf32>
    %115 = arith.addf %101, %114 : vector<16x128xf32>
    %116 = vector.broadcast %30 : vector<16x1xf32> to vector<16x128xf32>
    %117 = arith.mulf %116, %115 : vector<16x128xf32>
    %118 = arith.addf %92, %117 : vector<16x128xf32>
    %119 = vector.extract_strided_slice %39 {offsets = [0, 384], sizes = [16, 128], strides = [1, 1]} : vector<16x1024xbf16> to vector<16x128xbf16>
    %120 = vector.extract_strided_slice %39 {offsets = [0, 896], sizes = [16, 128], strides = [1, 1]} : vector<16x1024xbf16> to vector<16x128xbf16>
    %c3 = arith.constant 3 : index
    %c0_74 = arith.constant 0 : index
    %c0_75 = arith.constant 0 : index
    %121 = vector.load %arg8[%c3, %c0_74, %c0_75] : memref<8x128x128xbf16, #tpu.memory_space<vmem>>, vector<1x128x128xbf16>
    %122 = vector.shape_cast %121 : vector<1x128x128xbf16> to vector<128x128xbf16>
    %cst_76 = arith.constant dense<0.000000e+00> : vector<16x128xf32>
    %123 = tpu.matmul %119, %122, %cst_76 {dimension_numbers = #tpu.dot_dimension_numbers<[1], [0], [0], [1], [0, 0, 1, 1], [], []>} : vector<16x128xbf16>, vector<128x128xbf16>, vector<16x128xf32> -> vector<16x128xf32>
    %c3_77 = arith.constant 3 : index
    %c0_78 = arith.constant 0 : index
    %c0_79 = arith.constant 0 : index
    %124 = vector.load %arg9[%c3_77, %c0_78, %c0_79] : memref<8x1x128xf32, #tpu.memory_space<vmem>>, vector<1x1x128xf32>
    %125 = vector.shape_cast %124 : vector<1x1x128xf32> to vector<1x128xf32>
    %126 = vector.broadcast %125 : vector<1x128xf32> to vector<16x128xf32>
    %127 = arith.addf %123, %126 : vector<16x128xf32>
    %c7 = arith.constant 7 : index
    %c0_80 = arith.constant 0 : index
    %c0_81 = arith.constant 0 : index
    %128 = vector.load %arg8[%c7, %c0_80, %c0_81] : memref<8x128x128xbf16, #tpu.memory_space<vmem>>, vector<1x128x128xbf16>
    %129 = vector.shape_cast %128 : vector<1x128x128xbf16> to vector<128x128xbf16>
    %cst_82 = arith.constant dense<0.000000e+00> : vector<16x128xf32>
    %130 = tpu.matmul %120, %129, %cst_82 {dimension_numbers = #tpu.dot_dimension_numbers<[1], [0], [0], [1], [0, 0, 1, 1], [], []>} : vector<16x128xbf16>, vector<128x128xbf16>, vector<16x128xf32> -> vector<16x128xf32>
    %c7_83 = arith.constant 7 : index
    %c0_84 = arith.constant 0 : index
    %c0_85 = arith.constant 0 : index
    %131 = vector.load %arg9[%c7_83, %c0_84, %c0_85] : memref<8x1x128xf32, #tpu.memory_space<vmem>>, vector<1x1x128xf32>
    %132 = vector.shape_cast %131 : vector<1x1x128xf32> to vector<1x128xf32>
    %133 = vector.broadcast %132 : vector<1x128xf32> to vector<16x128xf32>
    %134 = arith.addf %130, %133 : vector<16x128xf32>
    %c3_86 = arith.constant 3 : index
    %c0_87 = arith.constant 0 : index
    %c0_88 = arith.constant 0 : index
    %135 = vector.load %arg11[%c3_86, %c0_87, %c0_88] : memref<4x16x128xf32, #tpu.memory_space<vmem>>, vector<1x16x128xf32>
    %136 = vector.shape_cast %135 : vector<1x16x128xf32> to vector<16x128xf32>
    %cst_89 = arith.constant 5.000000e-01 : f32
    %137 = vector.broadcast %cst_89 : f32 to vector<16x128xf32>
    %138 = arith.mulf %137, %134 : vector<16x128xf32>
    %139 = math.exp %138 : vector<16x128xf32>
    %140 = arith.mulf %136, %139 : vector<16x128xf32>
    %141 = arith.addf %127, %140 : vector<16x128xf32>
    %142 = vector.broadcast %31 : vector<16x1xf32> to vector<16x128xf32>
    %143 = arith.mulf %142, %141 : vector<16x128xf32>
    %144 = arith.addf %118, %143 : vector<16x128xf32>
    %c0_90 = arith.constant 0 : index
    %c0_91 = arith.constant 0 : index
    %145 = vector.load %arg12[%c0_90, %c0_91] : memref<16x128xf32, #tpu.memory_space<vmem>>, vector<16x128xf32>
    tpu.vector_store %arg12[%c0_90, %c0_91], %144 {strides = array<i32>} : memref<16x128xf32, #tpu.memory_space<vmem>>, vector<16x128xf32>,
    return
  }
  func.func @transform_0(%arg0: i32) -> (i32, i32) {
    %c0_i32 = arith.constant 0 : i32
    %c0_i32_0 = arith.constant 0 : i32
    return %arg0, %c0_i32 : i32, i32
  }
  func.func @transform_1(%arg0: i32) -> (i32, i32) {
    %c0_i32 = arith.constant 0 : i32
    %c0_i32_0 = arith.constant 0 : i32
    %c0_i32_1 = arith.constant 0 : i32
    return %c0_i32, %c0_i32_0 : i32, i32
  }
  func.func @transform_2(%arg0: i32) -> (i32, i32) {
    %c0_i32 = arith.constant 0 : i32
    %c0_i32_0 = arith.constant 0 : i32
    %c0_i32_1 = arith.constant 0 : i32
    return %c0_i32, %c0_i32_0 : i32, i32
  }
  func.func @transform_3(%arg0: i32) -> (i32, i32) {
    %c0_i32 = arith.constant 0 : i32
    %c0_i32_0 = arith.constant 0 : i32
    %c0_i32_1 = arith.constant 0 : i32
    return %c0_i32, %c0_i32_0 : i32, i32
  }
  func.func @transform_4(%arg0: i32) -> (i32, i32) {
    %c0_i32 = arith.constant 0 : i32
    %c0_i32_0 = arith.constant 0 : i32
    %c0_i32_1 = arith.constant 0 : i32
    return %c0_i32, %c0_i32_0 : i32, i32
  }
  func.func @transform_5(%arg0: i32) -> (i32, i32) {
    %c0_i32 = arith.constant 0 : i32
    %c0_i32_0 = arith.constant 0 : i32
    %c0_i32_1 = arith.constant 0 : i32
    return %c0_i32, %c0_i32_0 : i32, i32
  }
  func.func @transform_6(%arg0: i32) -> (i32, i32) {
    %c0_i32 = arith.constant 0 : i32
    %c0_i32_0 = arith.constant 0 : i32
    %c0_i32_1 = arith.constant 0 : i32
    return %c0_i32, %c0_i32_0 : i32, i32
  }
  func.func @transform_7(%arg0: i32) -> (i32, i32, i32) {
    %c0_i32 = arith.constant 0 : i32
    %c0_i32_0 = arith.constant 0 : i32
    %c0_i32_1 = arith.constant 0 : i32
    %c0_i32_2 = arith.constant 0 : i32
    return %c0_i32, %c0_i32_0, %c0_i32_1 : i32, i32, i32
  }
  func.func @transform_8(%arg0: i32) -> (i32, i32, i32) {
    %c0_i32 = arith.constant 0 : i32
    %c0_i32_0 = arith.constant 0 : i32
    %c0_i32_1 = arith.constant 0 : i32
    %c0_i32_2 = arith.constant 0 : i32
    return %c0_i32, %c0_i32_0, %c0_i32_1 : i32, i32, i32
  }
  func.func @transform_9(%arg0: i32) -> (i32, i32) {
    %c0_i32 = arith.constant 0 : i32
    %c0_i32_0 = arith.constant 0 : i32
    return %arg0, %c0_i32 : i32, i32
  }
  func.func @transform_10(%arg0: i32) -> (i32, i32, i32) {
    %c0_i32 = arith.constant 0 : i32
    %c0_i32_0 = arith.constant 0 : i32
    %c0_i32_1 = arith.constant 0 : i32
    return %c0_i32, %arg0, %c0_i32_0 : i32, i32, i32
  }
  func.func @transform_11(%arg0: i32) -> (i32, i32) {
    %c0_i32 = arith.constant 0 : i32
    %c0_i32_0 = arith.constant 0 : i32
    return %arg0, %c0_i32 : i32, i32
  }
}

</mosaic_0001>

<bundles_post_ra>
// kernel: tpu_custom_call.1
= control target key start
LH: loop header
LB: loop body
LE: loop exit
PB: predicated region body
PF: predicated region fallthrough
CT: control target
= control target key end

     0   :  { %16 = vsyncpa [#allocation3], 0  ;;  %s3170_s0 = inlined_call_operand.vmem [shape: f32[16,128], index: 0, kind: input, shape index: {}]   ;;  %s3171_s1 = inlined_call_operand.vmem [shape: f32[128,128], index: 1, kind: input, shape index: {}]   ;;  %s3172_s2 = inlined_call_operand.vmem [shape: f32[1,128], index: 2, kind: input, shape index: {}]   ;;  %s3173_s3 = inlined_call_operand.vmem [shape: f32[128,4], index: 3, kind: input, shape index: {}]   ;;  %s3174_s4 = inlined_call_operand.vmem [shape: f32[1,4], index: 4, kind: input, shape index: {}]   ;;  %s3175_s5 = inlined_call_operand.hbm [shape: bf16[128,1024], index: 5, kind: input, shape index: {}]   ;;  %s3176_s6 = inlined_call_operand.vmem [shape: f32[1,1024], index: 6, kind: input, shape index: {}]   ;;  %s3177_s7 = inlined_call_operand.hbm [shape: bf16[8,128,128], index: 7, kind: input, shape index: {}]   ;;  %s3178_s8 = inlined_call_operand.vmem [shape: f32[8,1,128], index: 8, kind: input, shape index: {}]   ;;  %s3179_s9 = inlined_call_operand.vmem [shape: f32[16,4], index: 9, kind: input, shape index: {}]   ;;  %s3180_s10 = inlined_call_operand.hbm [shape: f32[4,16,128], index: 10, kind: input, shape index: {}]   ;;  %s3181_s11 = inlined_call_operand.hbm [shape: f32[16,128], index: 11, kind: output, shape index: {}]  }
   0x1   :  { %17 = vsyncpa [#allocation6], 0 }
   0x2   :  { %18 = vsyncpa [#allocation4], 0  ;;  %s2718_s17 = smov [#allocation5]   ;;  %s2624_s21 = scalar_lea.hbm %s3177_s7, 8192 }
   0x3   :  { %s48_s18 = sshll.u32 %s2718_s17, 4  ;;  %p2625_p0 = scmp.ne.s32.totalorder %s3177_s7, %s2624_s21  ;;  %s49_s18 = int_to_ptr.vmem [resolvable:$true] %s48_s18 }
   0x4   :  { %p2628_p1 = scmp.lt.u32.totalorder %s2624_s21, %s3177_s7 }
   0x6   :  { %p2630_p2 = pnand %p2628_p1, %p2625_p0 }
   0x8   :  { %2633 = shalt.err (!%p2630_p2)
}
   0x9   :  { %s2634_s26 = scalar_lea.vmem %s49_s18, 8192  ;;  %p2639_p4 = scmp.lt.s32.totalorder %s49_s18, %s49_s18 }
   0xa   :  { %p2635_p3 = scmp.ne.s32.totalorder %s49_s18, %s2634_s26  ;;  %p2640_p5 = scmp.lt.s32.totalorder %s2634_s26, %s2634_s26 }
   0xc   :  { %p2641_p6 = por %p2640_p5, %p2639_p4 }
   0xe   :  { %p2642_p7 = pnand %p2641_p6, %p2635_p3 }
  0x10   :  { %2645 = shalt.err (!%p2642_p7)
}
  0x11   :  { %s2719_s27 = smov 64   ;;  %s2720_s28 = smov 4  }
  0x12   :  { %54 = dma.hbm_to_vmem [thread:$0]  %s3177_s7, 8192, %s49_s18, [#allocation6], %s2719_s27, %s2719_s27, %s2720_s28  }
  0x13   :  { %s2721_s12 = smov [#allocation2]   ;;  %s2646_s16 = scalar_lea.hbm %s3175_s5, 8192 }
  0x14   :  { %s34_s13 = sshll.u32 %s2721_s12, 4  ;;  %p2647_p8 = scmp.ne.s32.totalorder %s3175_s5, %s2646_s16  ;;  %s35_s13 = int_to_ptr.vmem [resolvable:$true] %s34_s13 }
  0x15   :  { %p2650_p9 = scmp.lt.u32.totalorder %s2646_s16, %s3175_s5 }
  0x17   :  { %p2652_p10 = pnand %p2650_p9, %p2647_p8 }
  0x19   :  { %2655 = shalt.err (!%p2652_p10)
}
  0x1a   :  { %s2656_s22 = scalar_lea.vmem %s35_s13, 8192  ;;  %p2661_p12 = scmp.lt.s32.totalorder %s35_s13, %s35_s13 }
  0x1b   :  { %p2657_p11 = scmp.ne.s32.totalorder %s35_s13, %s2656_s22  ;;  %p2662_p13 = scmp.lt.s32.totalorder %s2656_s22, %s2656_s22 }
  0x1d   :  { %p2663_p0 = por %p2662_p13, %p2661_p12 }
  0x1f   :  { %p2664_p1 = pnand %p2663_p0, %p2657_p11 }
  0x21   :  { %2667 = shalt.err (!%p2664_p1)
}
  0x22   :  { %s2722_s7 = smov 512   ;;  %s2723_s18 = smov 32  }
  0x23   :  { %40 = dma.hbm_to_vmem [thread:$0]  %s3175_s5, 8192, %s35_s13, [#allocation3], %s2722_s7, %s2722_s7, %s2723_s18  }
  0x24   :  { %s2724_s25 = smov [#allocation7]   ;;  %s2668_s29 = scalar_lea.hbm %s3180_s10, 1024 }
  0x25   :  { %s64_s26 = sshll.u32 %s2724_s25, 4  ;;  %p2669_p2 = scmp.ne.s32.totalorder %s3180_s10, %s2668_s29  ;;  %s65_s26 = int_to_ptr.vmem [resolvable:$true] %s64_s26 }
  0x26   :  { %p2672_p3 = scmp.lt.u32.totalorder %s2668_s29, %s3180_s10 }
  0x28   :  { %p2674_p4 = pnand %p2672_p3, %p2669_p2 }
  0x2a   :  { %2677 = shalt.err (!%p2674_p4)
}
  0x2b   :  { %s2678_s16 = scalar_lea.vmem %s65_s26, 1024  ;;  %p2683_p6 = scmp.lt.s32.totalorder %s65_s26, %s65_s26 }
  0x2c   :  { %p2679_p5 = scmp.ne.s32.totalorder %s65_s26, %s2678_s16  ;;  %p2684_p7 = scmp.lt.s32.totalorder %s2678_s16, %s2678_s16 }
  0x2e   :  { %p2685_p8 = por %p2684_p7, %p2683_p6 }
  0x30   :  { %p2686_p9 = pnand %p2685_p8, %p2679_p5 }
  0x32   :  { %2689 = shalt.err (!%p2686_p9)
}
  0x33   :  { %s2725_s5 = smov 128   ;;  %s2726_s13 = smov 8  }
  0x34   :  { %70 = dma.hbm_to_vmem [thread:$0]  %s3180_s10, 1024, %s65_s26, [#allocation6], %s2725_s5, %s2725_s5, %s2726_s13  }
  0x35   :  { %2712 = dma.done.wait [#allocation3], 8192  }
  0x36   :  { %2713 = vsyncadd [#allocation3], 4294959104 }
  0x37   :  { %2714 = dma.done.wait [#allocation6], 9216  }
  0x38   :  { %2715 = vsyncadd [#allocation6], 4294958080  ;;  %v84_v0 = vld [vmem:[%s3171_s1] sm:$0xff]  ;;  %v85_v1 = vld [vmem:[%s3171_s1 + $0x8] sm:$0xff]  ;;  %vm2729_vm0 = vmmov 0   ;;  %vm289_vm1 = vcmask 31744  }
  0x39   :  { %v86_v2 = vld [vmem:[%s3171_s1 + $0x10] sm:$0xff]  ;;  %v2448_v3 = vpack.c.bf16 %v85_v1, %v84_v0  ;;  %v87_v4 = vld [vmem:[%s3171_s1 + $0x18] sm:$0xff]  ;;  %v88_v6 = vld [vmem:[%s3171_s1 + $0x20] sm:$0xff]  ;;  %v2727_v0 = vmov 0  }
  0x3a   :  { %v2452_v5 = vpack.c.bf16 %v87_v4, %v86_v2  ;;  %v89_v7 = vld [vmem:[%s3171_s1 + $0x28] sm:$0xff]  ;;  %v90_v8 = vld [vmem:[%s3171_s1 + $0x30] sm:$0xff]  ;;  %v91_v10 = vld [vmem:[%s3171_s1 + $0x38] sm:$0xff]  ;;  %2528 = vset.pattern.permute.xlu0 %v2727_v0  ;;  %2529 = vset.pattern.permute.xlu1 %v2727_v0 }
  0x3b   :  { %2449 = vmatprep.subr.bf16.mxu0 %v2448_v3  ;;  %v2456_v9 = vpack.c.bf16 %v89_v7, %v88_v6  ;;  %v81_v11 = vld [vmem:[%s3170_s0] sm:$0xff]  ;;  %v2863_v12 = vld [vmem:[%s3170_s0 + $0x8] sm:$0xff]  ;;  %v186_v16 = vld [vmem:[%s3173_s3 + $0x10] sm:$0xff]  ;;  %v2460_v22 = vpack.c.bf16 %v91_v10, %v90_v8 }
  0x3c   :  { %2451 = vmatpush3.bf16.msra.mxu0 %v2448_v3  ;;  %v2866_v13 = vpack.c.bf16 %v2863_v12, %v81_v11  ;;  %2250 = vmatprep.mubr.f32.mxu0 %v81_v11  ;;  %v184_v14 = vld [vmem:[%s3173_s3] sm:$0xff]  ;;  %v185_v15 = vld [vmem:[%s3173_s3 + $0x8] sm:$0xff]  ;;  %v187_v18 = vld [vmem:[%s3173_s3 + $0x18] sm:$0xff] }
  0x3d   :  { %2453 = vmatprep.subr.bf16.mxu0 %v2452_v5  ;;  %v2480_v17 = vpack.c.bf16 %v185_v15, %v184_v14  ;;  %v2484_v19 = vpack.c.bf16 %v187_v18, %v186_v16  ;;  %v188_v20 = vld [vmem:[%s3173_s3 + $0x20] sm:$0xff]  ;;  %v189_v21 = vld [vmem:[%s3173_s3 + $0x28] sm:$0xff]  ;;  %v190_v25 = vld [vmem:[%s3173_s3 + $0x30] sm:$0xff] }
  0x3e   :  { %v92_v23 = vld [vmem:[%s3171_s1 + $0x40] sm:$0xff]  ;;  %v93_v24 = vld [vmem:[%s3171_s1 + $0x48] sm:$0xff]  ;;  %v191_v26 = vld [vmem:[%s3173_s3 + $0x38] sm:$0xff]  ;;  %v2488_v27 = vpack.c.bf16 %v189_v21, %v188_v20 }
  0x3f   :  { %2481 = vmatprep.subr.bf16.mxu1 %v2480_v17  ;;  %v94_v28 = vld [vmem:[%s3171_s1 + $0x50] sm:$0xff]  ;;  %v95_v29 = vld [vmem:[%s3171_s1 + $0x58] sm:$0xff]  ;;  %v2464_v30 = vpack.c.bf16 %v93_v24, %v92_v23  ;;  %v192_v31 = vld [vmem:[%s3173_s3 + $0x40] sm:$0xff]  ;;  %v2492_v33 = vpack.c.bf16 %v191_v26, %v190_v25 }
  0x40   :  { %2455 = vmatpush3.bf16.msra.mxu0 %v2452_v5  ;;  %2483 = vmatpush3.bf16.msra.mxu1 %v2480_v17  ;;  %v193_v32 = vld [vmem:[%s3173_s3 + $0x48] sm:$0xff]  ;;  %v96_v34 = vld [vmem:[%s3171_s1 + $0x60] sm:$0xff]  ;;  %v2468_v36 = vpack.c.bf16 %v95_v29, %v94_v28  ;;  %v194_v37 = vld [vmem:[%s3173_s3 + $0x50] sm:$0xff] }
  0x41   :  { %2457 = vmatprep.subr.bf16.mxu0 %v2456_v9  ;;  %2485 = vmatprep.subr.bf16.mxu1 %v2484_v19  ;;  %v97_v35 = vld [vmem:[%s3171_s1 + $0x68] sm:$0xff]  ;;  %v195_v38 = vld [vmem:[%s3173_s3 + $0x58] sm:$0xff]  ;;  %v2496_v39 = vpack.c.bf16 %v193_v32, %v192_v31  ;;  %v98_v40 = vld [vmem:[%s3171_s1 + $0x70] sm:$0xff] }
  0x42   :  { %v99_v41 = vld [vmem:[%s3171_s1 + $0x78] sm:$0xff]  ;;  %v2472_v42 = vpack.c.bf16 %v97_v35, %v96_v34  ;;  %v196_v43 = vld [vmem:[%s3173_s3 + $0x60] sm:$0xff]  ;;  %v197_v44 = vld [vmem:[%s3173_s3 + $0x68] sm:$0xff]  ;;  %v2500_v45 = vpack.c.bf16 %v195_v38, %v194_v37 }
  0x43   :  { %v2476_v46 = vpack.c.bf16 %v99_v41, %v98_v40  ;;  %v2504_v47 = vpack.c.bf16 %v197_v44, %v196_v43  ;;  %v198_v48 = vld [vmem:[%s3173_s3 + $0x70] sm:$0xff]  ;;  %v199_v49 = vld [vmem:[%s3173_s3 + $0x78] sm:$0xff]  ;;  %v312_v51 = vld [vmem:[#allocation2] sm:$0xff] }
  0x44   :  { %2459 = vmatpush3.bf16.msra.mxu0 %v2456_v9  ;;  %2487 = vmatpush3.bf16.msra.mxu1 %v2484_v19  ;;  %v2508_v50 = vpack.c.bf16 %v199_v49, %v198_v48  ;;  %v316_v52 = vld [vmem:[#allocation2 + $0x20] sm:$0xff]  ;;  %v2944_v9 = vld [vmem:[#allocation2 + $0x8] sm:$0xff]  ;;  %v314_v24 = vld [vmem:[#allocation2 + $0x10] sm:$0xff] }
  0x45   :  { %2461 = vmatprep.subr.bf16.mxu0 %v2460_v22  ;;  %2489 = vmatprep.subr.bf16.mxu1 %v2488_v27  ;;  %v1968_v53 = vcombine.high %v312_v51, %v316_v52  ;;  %v1967_v54 = vcombine.low %v312_v51, %v316_v52  ;;  %v320_v55 = vld [vmem:[#allocation2 + $0x40] sm:$0xff]  ;;  %v2946_v10 = vld [vmem:[#allocation2 + $0x28] sm:$0xff]  ;;  %v318_v25 = vld [vmem:[#allocation2 + $0x30] sm:$0xff] }
  0x46   :  { %v324_v56 = vld [vmem:[#allocation2 + $0x60] sm:$0xff]  ;;  %v1970_v14 = vcombine.high %v2944_v9, %v2946_v10  ;;  %v322_v28 = vld [vmem:[#allocation2 + $0x50] sm:$0xff] }
  0x47   :  { %v1976_v57 = vcombine.high %v320_v55, %v324_v56  ;;  %v1975_v58 = vcombine.low %v320_v55, %v324_v56  ;;  %v328_v59 = vld [vmem:[#allocation2 + $0x80] sm:$0xff]  ;;  %v326_v29 = vld [vmem:[#allocation2 + $0x70] sm:$0xff] }
  0x48   :  { %2463 = vmatpush3.bf16.msra.mxu0 %v2460_v22  ;;  %2491 = vmatpush3.bf16.msra.mxu1 %v2488_v27  ;;  %v332_v60 = vld [vmem:[#allocation2 + $0xa0] sm:$0xff]  ;;  %v1972_v27 = vcombine.high %v314_v24, %v318_v25  ;;  %v1980_v31 = vcombine.high %v322_v28, %v326_v29  ;;  %v330_v32 = vld [vmem:[#allocation2 + $0x90] sm:$0xff]  ;;  %v1979_v34 = vcombine.low %v322_v28, %v326_v29  ;;  %v315_v29 = vld [vmem:[#allocation2 + $0x18] sm:$0xff] }
  0x49   :  { %2465 = vmatprep.subr.bf16.mxu0 %v2464_v30  ;;  %2493 = vmatprep.subr.bf16.mxu1 %v2492_v33  ;;  %v336_v61 = vld [vmem:[#allocation2 + $0xc0] sm:$0xff]  ;;  %v1984_v62 = vcombine.high %v328_v59, %v332_v60  ;;  %v1983_v1 = vcombine.low %v328_v59, %v332_v60  ;;  %v342_v37 = vld [vmem:[#allocation2 + $0xf0] sm:$0xff] }
  0x4a   :  { %v340_v63 = vld [vmem:[#allocation2 + $0xe0] sm:$0xff]  ;;  %v346_v40 = vld [vmem:[#allocation2 + $0x110] sm:$0xff] }
  0x4b   :  { %v1992_v2 = vcombine.high %v336_v61, %v340_v63  ;;  %v344_v3 = vld [vmem:[#allocation2 + $0x100] sm:$0xff]  ;;  %v1991_v5 = vcombine.low %v336_v61, %v340_v63  ;;  %v350_v41 = vld [vmem:[#allocation2 + $0x130] sm:$0xff]  ;;  %v325_v63 = vld [vmem:[#allocation2 + $0x68] sm:$0xff] }
  0x4c   :  { %2467 = vmatpush3.bf16.msra.mxu0 %v2464_v30  ;;  %2495 = vmatpush3.bf16.msra.mxu1 %v2492_v33  ;;  %v348_v4 = vld [vmem:[#allocation2 + $0x120] sm:$0xff]  ;;  %v1971_v30 = vcombine.low %v314_v24, %v318_v25  ;;  %v334_v33 = vld [vmem:[#allocation2 + $0xb0] sm:$0xff]  ;;  %v2004_v43 = vcombine.high %v346_v40, %v350_v41  ;;  %v369_v25 = vld [vmem:[#allocation2 + $0x1c8] sm:$0xff] }
  0x4d   :  { %2469 = vmatprep.subr.bf16.mxu0 %v2468_v36  ;;  %2497 = vmatprep.subr.bf16.mxu1 %v2496_v39  ;;  %v2000_v6 = vcombine.high %v344_v3, %v348_v4  ;;  %v352_v7 = vld [vmem:[#allocation2 + $0x140] sm:$0xff]  ;;  %v1999_v11 = vcombine.low %v344_v3, %v348_v4  ;;  %v1988_v35 = vcombine.high %v330_v32, %v334_v33  ;;  %v354_v44 = vld [vmem:[#allocation2 + $0x150] sm:$0xff]  ;;  %v329_v4 = vld [vmem:[#allocation2 + $0x88] sm:$0xff] }
  0x4e   :  { %v356_v8 = vld [vmem:[#allocation2 + $0x160] sm:$0xff]  ;;  %v1987_v38 = vcombine.low %v330_v32, %v334_v33  ;;  %v362_v48 = vld [vmem:[#allocation2 + $0x190] sm:$0xff]  ;;  %v323_v33 = vld [vmem:[#allocation2 + $0x58] sm:$0xff] }
  0x4f   :  { %v2008_v15 = vcombine.high %v352_v7, %v356_v8  ;;  %v360_v16 = vld [vmem:[#allocation2 + $0x180] sm:$0xff]  ;;  %v2007_v18 = vcombine.low %v352_v7, %v356_v8  ;;  %v366_v49 = vld [vmem:[#allocation2 + $0x1b0] sm:$0xff]  ;;  %v337_v8 = vld [vmem:[#allocation2 + $0xc8] sm:$0xff] }
  0x50   :  { %2471 = vmatpush3.bf16.msra.mxu0 %v2468_v36  ;;  %2499 = vmatpush3.bf16.msra.mxu1 %v2496_v39  ;;  %v364_v17 = vld [vmem:[#allocation2 + $0x1a0] sm:$0xff]  ;;  %v338_v36 = vld [vmem:[#allocation2 + $0xd0] sm:$0xff]  ;;  %v2020_v51 = vcombine.high %v362_v48, %v366_v49 }
  0x51   :  { %2473 = vmatprep.subr.bf16.mxu0 %v2472_v42  ;;  %2501 = vmatprep.subr.bf16.mxu1 %v2500_v45  ;;  %v2016_v19 = vcombine.high %v360_v16, %v364_v17  ;;  %v368_v20 = vld [vmem:[#allocation2 + $0x1c0] sm:$0xff]  ;;  %v2015_v22 = vcombine.low %v360_v16, %v364_v17  ;;  %v1996_v39 = vcombine.high %v338_v36, %v342_v37  ;;  %v370_v52 = vld [vmem:[#allocation2 + $0x1d0] sm:$0xff]  ;;  %v345_v16 = vld [vmem:[#allocation2 + $0x108] sm:$0xff] }
  0x52   :  { %v372_v21 = vld [vmem:[#allocation2 + $0x1e0] sm:$0xff]  ;;  %v349_v17 = vld [vmem:[#allocation2 + $0x128] sm:$0xff] }
  0x53   :  { %v2024_v23 = vcombine.high %v368_v20, %v372_v21  ;;  %v2023_v26 = vcombine.low %v368_v20, %v372_v21  ;;  %v353_v20 = vld [vmem:[#allocation2 + $0x148] sm:$0xff] }
  0x54   :  { %2475 = vmatpush3.bf16.msra.mxu0 %v2472_v42  ;;  %2503 = vmatpush3.bf16.msra.mxu1 %v2500_v45  ;;  %v1995_v42 = vcombine.low %v338_v36, %v342_v37  ;;  %v358_v45 = vld [vmem:[#allocation2 + $0x170] sm:$0xff]  ;;  %v361_v21 = vld [vmem:[#allocation2 + $0x188] sm:$0xff]  ;;  %v331_v37 = vld [vmem:[#allocation2 + $0x98] sm:$0xff] }
  0x55   :  { %2477 = vmatprep.subr.bf16.mxu0 %v2476_v46  ;;  %2505 = vmatprep.subr.bf16.mxu1 %v2504_v47 }
  0x58   :  { %2479 = vmatpush3.bf16.msra.mxu0 %v2476_v46  ;;  %2507 = vmatpush3.bf16.msra.mxu1 %v2504_v47  ;;  %v2003_v46 = vcombine.low %v346_v40, %v350_v41  ;;  %v2012_v47 = vcombine.high %v354_v44, %v358_v45  ;;  %v339_v41 = vld [vmem:[#allocation2 + $0xd8] sm:$0xff] }
  0x59   :  { %2509 = vmatprep.subr.bf16.mxu1 %v2508_v50  ;;  %738 = vmatprep.subr.bf16.mxu0 %v1968_v53  ;;  %v374_v53 = vld [vmem:[#allocation2 + $0x1f0] sm:$0xff] }
  0x5a   :  { %v2028_v55 = vcombine.high %v370_v52, %v374_v53  ;;  %v2027_v56 = vcombine.low %v370_v52, %v374_v53  ;;  %v363_v52 = vld [vmem:[#allocation2 + $0x198] sm:$0xff] }
  0x5b   :  { %2251 = vmatmul.mubr.f32.vlgmr.msra.gmra.mrb[0].mxu0 %v2863_v12  ;;  %v1969_v12 = vcombine.low %v2944_v9, %v2946_v10  ;;  %v357_v9 = vld [vmem:[#allocation2 + $0x168] sm:$0xff]  ;;  %v2001_v10 = vcombine.low %v345_v16, %v349_v17  ;;  %v367_v53 = vld [vmem:[#allocation2 + $0x1b8] sm:$0xff] }
  0x5c   :  { %2511 = vmatpush3.bf16.msra.mxu1 %v2508_v50  ;;  %739 = vmatpush1.bf16.msra.mxu0 %v1967_v54  ;;  %v2011_v50 = vcombine.low %v354_v44, %v358_v45  ;;  %v2019_v54 = vcombine.low %v362_v48, %v366_v49  ;;  %v347_v45 = vld [vmem:[#allocation2 + $0x118] sm:$0xff] }
  0x5d   :  { %740 = vmatprep.subr.bf16.mxu0 %v1976_v57  ;;  %770 = vmatprep.mubr.bf16.mxu0 %v2727_v0  ;;  %v1965_v57 = vld [vmem:[%s3172_s2] ss:$0 sm:$0xff]  ;;  %v355_v49 = vld [vmem:[#allocation2 + $0x158] sm:$0xff] }
  0x5e   :  { %781 = vmatprep.subr.bf16.mxu1 %v1970_v14 }
  0x60   :  { %741 = vmatpush1.bf16.msra.mxu0 %v1975_v58 }
  0x61   :  { %742 = vmatprep.subr.bf16.mxu0 %v1984_v62  ;;  %v321_v62 = vld [vmem:[#allocation2 + $0x48] sm:$0xff] }
  0x62   :  { %v1978_v3 = vcombine.high %v321_v62, %v325_v63 }
  0x64   :  { %743 = vmatpush1.bf16.msra.mxu0 %v1983_v1 }
  0x65   :  { %744 = vmatprep.subr.bf16.mxu0 %v1992_v2 }
  0x68   :  { %745 = vmatpush1.bf16.msra.mxu0 %v1991_v5  ;;  %v333_v5 = vld [vmem:[#allocation2 + $0xa8] sm:$0xff] }
  0x69   :  { %746 = vmatprep.subr.bf16.mxu0 %v2000_v6  ;;  %v1977_v6 = vcombine.low %v321_v62, %v325_v63  ;;  %v1986_v7 = vcombine.high %v329_v4, %v333_v5  ;;  %v1985_v14 = vcombine.low %v329_v4, %v333_v5  ;;  %v378_v62 = vlaneseq  ;;  %v2538_v5 = vld [vmem:[#allocation5 + $0x110] sm:$0xff]  }
  0x6a   :  { %v2728_v63 = vmov 0.0  }
  0x6c   :  { %747 = vmatpush1.bf16.msra.mxu0 %v1999_v11  ;;  %v341_v11 = vld [vmem:[#allocation2 + $0xe8] sm:$0xff] }
  0x6d   :  { %748 = vmatprep.subr.bf16.mxu0 %v2008_v15  ;;  %v1994_v15 = vcombine.high %v337_v8, %v341_v11 }
  0x70   :  { %749 = vmatpush1.bf16.msra.mxu0 %v2007_v18  ;;  %v1993_v18 = vcombine.low %v337_v8, %v341_v11 }
  0x71   :  { %750 = vmatprep.subr.bf16.mxu0 %v2016_v19  ;;  %v2002_v19 = vcombine.high %v345_v16, %v349_v17  ;;  %v2546_v16 = vld [vmem:[#allocation5 + $0x18] sm:$0xff]  }
  0x74   :  { %751 = vmatpush1.bf16.msra.mxu0 %v2015_v22  ;;  %v365_v22 = vld [vmem:[#allocation2 + $0x1a8] sm:$0xff] }
  0x75   :  { %752 = vmatprep.subr.bf16.mxu0 %v2024_v23  ;;  %v2009_v23 = vcombine.low %v353_v20, %v357_v9  ;;  %v2018_v24 = vcombine.high %v361_v21, %v365_v22 }
  0x78   :  { %753 = vmatpush1.bf16.msra.mxu0 %v2023_v26  ;;  %v373_v26 = vld [vmem:[#allocation2 + $0x1e8] sm:$0xff] }
  0x79   :  { %824 = vmatprep.subr.bf16.mxu0 %v1972_v27  ;;  %v2017_v27 = vcombine.low %v361_v21, %v365_v22  ;;  %v2026_v28 = vcombine.high %v369_v25, %v373_v26  ;;  %v2543_v22 = vld [vmem:[#allocation5 + $0x128] sm:$0xff]  }
  0x7b   :  { %771 = vmatmul.mubr.bf16.vlgmr.msra.gmra.mrb[4].mxu0 %v2866_v13 }
  0x7c   :  { %825 = vmatpush1.bf16.msra.mxu0 %v1971_v30  ;;  %856 = vmatprep.mubr.bf16.mxu0 %v2727_v0  ;;  %v319_v30 = vld [vmem:[#allocation2 + $0x38] sm:$0xff] }
  0x7d   :  { %826 = vmatprep.subr.bf16.mxu0 %v1980_v31  ;;  %v2025_v31 = vcombine.low %v369_v25, %v373_v26  ;;  %v1974_v32 = vcombine.high %v315_v29, %v319_v30 }
  0x80   :  { %827 = vmatpush1.bf16.msra.mxu0 %v1979_v34  ;;  %v327_v34 = vld [vmem:[#allocation2 + $0x78] sm:$0xff] }
  0x81   :  { %828 = vmatprep.subr.bf16.mxu0 %v1988_v35  ;;  %v1973_v35 = vcombine.low %v315_v29, %v319_v30  ;;  %v1982_v36 = vcombine.high %v323_v33, %v327_v34 }
  0x84   :  { %829 = vmatpush1.bf16.msra.mxu0 %v1987_v38  ;;  %v335_v38 = vld [vmem:[#allocation2 + $0xb8] sm:$0xff] }
  0x85   :  { %830 = vmatprep.subr.bf16.mxu0 %v1996_v39  ;;  %v1981_v39 = vcombine.low %v323_v33, %v327_v34  ;;  %v1990_v40 = vcombine.high %v331_v37, %v335_v38 }
  0x88   :  { %831 = vmatpush1.bf16.msra.mxu0 %v1995_v42  ;;  %v343_v42 = vld [vmem:[#allocation2 + $0xf8] sm:$0xff] }
  0x89   :  { %832 = vmatprep.subr.bf16.mxu0 %v2004_v43  ;;  %v1989_v43 = vcombine.low %v331_v37, %v335_v38  ;;  %v1998_v44 = vcombine.high %v339_v41, %v343_v42  ;;  %v2547_v38 = vld [vmem:[#allocation5 + $0x138] sm:$0xff]  }
  0x8c   :  { %833 = vmatpush1.bf16.msra.mxu0 %v2003_v46  ;;  %v351_v46 = vld [vmem:[#allocation2 + $0x138] sm:$0xff] }
  0x8d   :  { %834 = vmatprep.subr.bf16.mxu0 %v2012_v47  ;;  %v1997_v47 = vcombine.low %v339_v41, %v343_v42  ;;  %v2006_v48 = vcombine.high %v347_v45, %v351_v46  ;;  %v2556_v42 = vld [vmem:[#allocation5 + $0x40] sm:$0xff]  }
  0x90   :  { %835 = vmatpush1.bf16.msra.mxu0 %v2011_v50  ;;  %v359_v50 = vld [vmem:[#allocation2 + $0x178] sm:$0xff] }
  0x91   :  { %836 = vmatprep.subr.bf16.mxu0 %v2020_v51  ;;  %v2005_v51 = vcombine.low %v347_v45, %v351_v46 }
  0x94   :  { %837 = vmatpush1.bf16.msra.mxu0 %v2019_v54  ;;  %v2013_v54 = vcombine.low %v355_v49, %v359_v50 }
  0x95   :  { %838 = vmatprep.subr.bf16.mxu0 %v2028_v55  ;;  %v2022_v55 = vcombine.high %v363_v52, %v367_v53 }
  0x98   :  { %839 = vmatpush1.bf16.msra.mxu0 %v2027_v56  ;;  %v371_v56 = vld [vmem:[#allocation2 + $0x1d8] sm:$0xff] }
  0x99   :  { %2288 = vmatprep.subr.bf16.mxu0 %v2728_v63 }
  0x9b   :  { %857 = vmatmul.mubr.bf16.vlgmr.msra.gmra.mrb[8].mxu0 %v2866_v13 }
  0x9c   :  { %2304 = vmatprep.mubr.msk.bf16.mxu0 %vm2729_vm0, %v2728_v63 }
 0x12e   :  { %v2252_v58 = vpop.f32.mrb[0].mxu0 }
 0x12f   :  { %v179_v59 = vadd.f32 %v2252_v58, %v1965_v57  ;;  %v173_v60 = vpop.f32.mrb[1].mxu0  ;;  %v2021_v58 = vcombine.low %v363_v52, %v367_v53 }
 0x130   :  { %v174_v61 = vadd.f32 %v1965_v57, %v173_v60  ;;  %v375_v57 = vld [vmem:[#allocation2 + $0x1f8] sm:$0xff] }
 0x131   :  { %v183_v2 = vmax.f32 %v179_v59, 0.0  ;;  %v2030_v59 = vcombine.high %v371_v56, %v375_v57  ;;  %v2029_v60 = vcombine.low %v371_v56, %v375_v57 }
 0x132   :  { %v182_v1 = vmax.f32 %v174_v61, 0.0  ;;  %v2536_v61 = vld [vmem:[#allocation5 + $0x100] sm:$0xff]  }
 0x134   :  { %2285 = vmatprep.mubr.f32.mxu1 %v182_v1  ;;  %v2540_v1 = vld [vmem:[#allocation5] sm:$0xff]  }
 0x135   :  { %2286 = vmatmul.mubr.f32.vlgmr.msra.gmra.mrb[0].mxu1 %v183_v2  ;;  %v2537_v2 = vld [vmem:[#allocation5 + $0x108] sm:$0xff]   ;;  %2289 = vmatpush3.bf16.msra.mxu0 %v2540_v1 }
 0x136   :  { %782 = vmatpush1.bf16.msra.mxu1 %v1969_v12  ;;  %813 = vmatprep.mubr.bf16.mxu1 %v2727_v0  ;;  %v2010_v12 = vcombine.high %v353_v20, %v357_v9  ;;  %v2548_v20 = vld [vmem:[#allocation5 + $0x20] sm:$0xff]  }
 0x137   :  { %783 = vmatprep.subr.bf16.mxu1 %v1978_v3  ;;  %v2970_v3 = vshrl.u32 %v378_v62, 7  ;;  %2290 = vmatprep.subr.bf16.mxu0 %v2728_v63  ;;  %v2549_v62 = vld [vmem:[#allocation5 + $0x140] sm:$0xff]  }
 0x139   :  { %v388_v4 = vsub.s32 2, %v2970_v3  ;;  %v380_v11 = vsub.s32 0, %v2970_v3  ;;  %v392_v33 = vsub.s32 3, %v2970_v3  ;;  %v396_v45 = vsub.s32 4, %v2970_v3 }
 0x13a   :  { %784 = vmatpush1.bf16.msra.mxu1 %v1977_v6  ;;  %v2979_v6 = vld [vmem:[%s3176_s6] sm:$0xff]  ;;  %v400_v46 = vsub.s32 5, %v2970_v3 }
 0x13b   :  { %785 = vmatprep.subr.bf16.mxu1 %v1986_v7  ;;  %v2544_v7 = vld [vmem:[#allocation5 + $0x10] sm:$0xff]   ;;  %v2983_v8 = vrot.slane %v2979_v6, %v388_v4  ;;  %v381_v17 = vrot.slane %v2979_v6, %v380_v11  ;;  %v3002_v37 = vrot.slane %v2979_v6, %v392_v33  ;;  %v2551_v11 = vld [vmem:[#allocation5 + $0x148] sm:$0xff]  }
 0x13c   :  { %v2568_v4 = vld [vmem:[#allocation5 + $0x70] sm:$0xff]  }
 0x13e   :  { %786 = vmatpush1.bf16.msra.mxu1 %v1985_v14  ;;  %v2539_v14 = vld [vmem:[#allocation5 + $0x118] sm:$0xff]  }
 0x13f   :  { %787 = vmatprep.subr.bf16.mxu1 %v1994_v15  ;;  %v384_v15 = vsub.s32 1, %v2970_v3 }
 0x142   :  { %788 = vmatpush1.bf16.msra.mxu1 %v1993_v18  ;;  %v2541_v18 = vld [vmem:[#allocation5 + $0x120] sm:$0xff]  }
 0x143   :  { %789 = vmatprep.subr.bf16.mxu1 %v2002_v19  ;;  %v385_v19 = vrot.slane %v2979_v6, %v384_v15  ;;  %v2572_v15 = vld [vmem:[#allocation5 + $0x80] sm:$0xff]  }
 0x146   :  { %790 = vmatpush1.bf16.msra.mxu1 %v2001_v10 }
 0x147   :  { %791 = vmatprep.subr.bf16.mxu1 %v2010_v12 }
 0x14a   :  { %792 = vmatpush1.bf16.msra.mxu1 %v2009_v23 }
 0x14b   :  { %793 = vmatprep.subr.bf16.mxu1 %v2018_v24 }
 0x14e   :  { %794 = vmatpush1.bf16.msra.mxu1 %v2017_v27  ;;  %v772_v9 = vpop.f32.mrb[4].mxu0  ;;  %v2550_v27 = vld [vmem:[#allocation5 + $0x28] sm:$0xff]  }
 0x14f   :  { %795 = vmatprep.subr.bf16.mxu1 %v2026_v28  ;;  %v773_v10 = vadd.f32 %v772_v9, %v381_v17  ;;  %v774_v12 = vpop.f32.mrb[5].mxu0  ;;  %v2561_v9 = vld [vmem:[#allocation5 + $0x170] sm:$0xff]  }
 0x150   :  { %v775_v21 = vadd.f32 %v774_v12, %v385_v19  ;;  %v776_v23 = vpop.f32.mrb[6].mxu0  ;;  %v2563_v12 = vld [vmem:[#allocation5 + $0x178] sm:$0xff]  }
 0x151   :  { %v910_v24 = vmax.f32 %v773_v10, 0.0  ;;  %v777_v25 = vadd.f32 %v776_v23, %v381_v17  ;;  %v778_v26 = vpop.f32.mrb[7].mxu0  ;;  %v2557_v17 = vld [vmem:[#allocation5 + $0x160] sm:$0xff]   ;;  %v2584_v23 = vld [vmem:[#allocation5 + $0xb0] sm:$0xff]  }
 0x152   :  { %796 = vmatpush1.bf16.msra.mxu1 %v2025_v31  ;;  %v911_v28 = vmax.f32 %v775_v21, 0.0  ;;  %v779_v29 = vadd.f32 %v778_v26, %v385_v19  ;;  %v2559_v19 = vld [vmem:[#allocation5 + $0x168] sm:$0xff]   ;;  %v2580_v10 = vld [vmem:[#allocation5 + $0xa0] sm:$0xff]   ;;  %v2569_v26 = vld [vmem:[#allocation5 + $0x190] sm:$0xff]  }
 0x153   :  { %867 = vmatprep.subr.bf16.mxu1 %v1974_v32  ;;  %v918_v30 = vmax.f32 %v777_v25, 0.0  ;;  %v2545_v32 = vld [vmem:[#allocation5 + $0x130] sm:$0xff]   ;;  %v2582_v21 = vld [vmem:[#allocation5 + $0xa8] sm:$0xff]   ;;  %v2586_v25 = vld [vmem:[#allocation5 + $0xb8] sm:$0xff]  }
 0x154   :  { %v919_v31 = vmax.f32 %v779_v29, 0.0  ;;  %v2575_v29 = vld [vmem:[#allocation5 + $0x1a8] sm:$0xff]  }
 0x155   :  { %814 = vmatmul.mubr.bf16.vlgmr.msra.gmra.mrb[4].mxu1 %v2866_v13  ;;  %v926_v34 = vpack.c.bf16 %v918_v30, %v910_v24  ;;  %v2567_v24 = vld [vmem:[#allocation5 + $0x188] sm:$0xff]   ;;  %v2577_v30 = vld [vmem:[#allocation5 + $0x1b0] sm:$0xff]  }
 0x156   :  { %868 = vmatpush1.bf16.msra.mxu1 %v1973_v35  ;;  %899 = vmatprep.mubr.bf16.mxu1 %v2727_v0  ;;  %v2014_v0 = vcombine.high %v355_v49, %v359_v50  ;;  %v2552_v35 = vld [vmem:[#allocation5 + $0x30] sm:$0xff]   ;;  %v401_v49 = vrot.slane %v2979_v6, %v400_v46  ;;  %v2564_v50 = vld [vmem:[#allocation5 + $0x60] sm:$0xff]  }
 0x157   :  { %869 = vmatprep.subr.bf16.mxu1 %v1982_v36  ;;  %v2998_v36 = vpack.c.bf16 %v919_v31, %v911_v28  ;;  %v2573_v28 = vld [vmem:[#allocation5 + $0x1a0] sm:$0xff]  }
 0x158   :  { %v1966_v31 = vld [vmem:[%s3174_s4] ss:$0 sm:$0xff] }
 0x15a   :  { %870 = vmatpush1.bf16.msra.mxu1 %v1981_v39  ;;  %v2554_v39 = vld [vmem:[#allocation5 + $0x38] sm:$0xff]  }
 0x15b   :  { %871 = vmatprep.subr.bf16.mxu1 %v1990_v40  ;;  %v404_v40 = vsub.s32 6, %v2970_v3 }
 0x15d   :  { %v3008_v41 = vrot.slane %v2979_v6, %v404_v40 }
 0x15e   :  { %872 = vmatpush1.bf16.msra.mxu1 %v1989_v43  ;;  %v2558_v43 = vld [vmem:[#allocation5 + $0x48] sm:$0xff]  }
 0x15f   :  { %873 = vmatprep.subr.bf16.mxu1 %v1998_v44  ;;  %v2560_v44 = vld [vmem:[#allocation5 + $0x50] sm:$0xff]  }
 0x162   :  { %874 = vmatpush1.bf16.msra.mxu1 %v1997_v47  ;;  %v2562_v47 = vld [vmem:[#allocation5 + $0x58] sm:$0xff]  }
 0x163   :  { %875 = vmatprep.subr.bf16.mxu1 %v2006_v48  ;;  %v397_v48 = vrot.slane %v2979_v6, %v396_v45 }
 0x166   :  { %876 = vmatpush1.bf16.msra.mxu1 %v2005_v51 }
 0x167   :  { %877 = vmatprep.subr.bf16.mxu1 %v2014_v0 }
 0x16a   :  { %878 = vmatpush1.bf16.msra.mxu1 %v2013_v54 }
 0x16b   :  { %879 = vmatprep.subr.bf16.mxu1 %v2022_v55 }
 0x16e   :  { %880 = vmatpush1.bf16.msra.mxu1 %v2021_v58  ;;  %v858_v51 = vpop.f32.mrb[8].mxu0  ;;  %v2566_v58 = vld [vmem:[#allocation5 + $0x68] sm:$0xff]  }
 0x16f   :  { %881 = vmatprep.subr.bf16.mxu1 %v2030_v59  ;;  %v859_v0 = vadd.f32 %v858_v51, %v397_v48  ;;  %v860_v52 = vpop.f32.mrb[9].mxu0 }
 0x170   :  { %v861_v53 = vadd.f32 %v860_v52, %v401_v49  ;;  %v862_v54 = vpop.f32.mrb[10].mxu0 }
 0x171   :  { %v914_v55 = vmax.f32 %v859_v0, 0.0  ;;  %v863_v56 = vadd.f32 %v862_v54, %v397_v48  ;;  %v864_v57 = vpop.f32.mrb[11].mxu0 }
 0x172   :  { %882 = vmatpush1.bf16.msra.mxu1 %v2029_v60  ;;  %v915_v59 = vmax.f32 %v861_v53, 0.0  ;;  %v865_v60 = vadd.f32 %v864_v57, %v401_v49 }
 0x173   :  { %2308 = vmatprep.subr.bf16.mxu1 %v2728_v63 }
 0x174   :  { %v923_v1 = vmax.f32 %v865_v60, 0.0 }
 0x175   :  { %900 = vmatmul.mubr.bf16.vlgmr.msra.gmra.mrb[8].mxu1 %v2866_v13  ;;  %v2542_v13 = vld [vmem:[#allocation5 + $0x8] sm:$0xff]  }
 0x176   :  { %2309 = vmatpush3.bf16.msra.mxu1 %v2536_v61  ;;  %2324 = vmatprep.mubr.msk.bf16.mxu1 %vm2729_vm0, %v2728_v63  ;;  %v922_v61 = vmax.f32 %v863_v56, 0.0 }
 0x177   :  { %2310 = vmatprep.subr.bf16.mxu1 %v2728_v63  ;;  %2291 = vmatpush3.bf16.msra.mxu0 %v2542_v13 }
 0x178   :  { %2292 = vmatprep.subr.bf16.mxu0 %v2728_v63  ;;  %v930_v13 = vpack.c.bf16 %v922_v61, %v914_v55  ;;  %v2590_v61 = vld [vmem:[#allocation5 + $0xc8] sm:$0xff]  }
 0x17a   :  { %2311 = vmatpush3.bf16.msra.mxu1 %v2537_v2  ;;  %v408_v2 = vsub.s32 7, %v2970_v3  ;;  %v2553_v3 = vld [vmem:[#allocation5 + $0x150] sm:$0xff]  }
 0x17b   :  { %2312 = vmatprep.subr.bf16.mxu1 %v2728_v63  ;;  %2293 = vmatpush3.bf16.msra.mxu0 %v2544_v7 }
 0x17c   :  { %2294 = vmatprep.subr.bf16.mxu0 %v2728_v63  ;;  %v3026_v7 = vrot.slane %v2979_v6, %v408_v2  ;;  %v2555_v6 = vld [vmem:[#allocation5 + $0x158] sm:$0xff]   ;;  %v2598_v2 = vld [vmem:[#allocation5 + $0xf0] sm:$0xff]  }
 0x17e   :  { %2313 = vmatpush3.bf16.msra.mxu1 %v2538_v5  ;;  %v931_v5 = vpack.c.bf16 %v923_v1, %v915_v59  ;;  %v2597_v1 = vld [vmem:[#allocation5 + $0xe8] sm:$0xff]  }
 0x17f   :  { %2314 = vmatprep.subr.bf16.mxu1 %v2728_v63  ;;  %2295 = vmatpush3.bf16.msra.mxu0 %v2546_v16  ;;  %v2574_v16 = vld [vmem:[#allocation5 + $0x88] sm:$0xff]  }
 0x180   :  { %2296 = vmatprep.subr.bf16.mxu0 %v2728_v63 }
 0x182   :  { %2315 = vmatpush3.bf16.msra.mxu1 %v2539_v14  ;;  %v2570_v14 = vld [vmem:[#allocation5 + $0x78] sm:$0xff]  }
 0x183   :  { %2316 = vmatprep.subr.bf16.mxu1 %v2728_v63  ;;  %2297 = vmatpush3.bf16.msra.mxu0 %v2548_v20  ;;  %v2578_v20 = vld [vmem:[#allocation5 + $0x98] sm:$0xff]  }
 0x184   :  { %2298 = vmatprep.subr.bf16.mxu0 %v2728_v63 }
 0x186   :  { %2317 = vmatpush3.bf16.msra.mxu1 %v2541_v18  ;;  %v2576_v18 = vld [vmem:[#allocation5 + $0x90] sm:$0xff]  }
 0x187   :  { %2318 = vmatprep.subr.bf16.mxu1 %v2728_v63  ;;  %2299 = vmatpush3.bf16.msra.mxu0 %v2550_v27  ;;  %v2571_v27 = vld [vmem:[#allocation5 + $0x198] sm:$0xff]  }
 0x188   :  { %2300 = vmatprep.subr.bf16.mxu0 %v2728_v63 }
 0x18a   :  { %2319 = vmatpush3.bf16.msra.mxu1 %v2543_v22  ;;  %v2565_v22 = vld [vmem:[#allocation5 + $0x180] sm:$0xff]  }
 0x18b   :  { %2320 = vmatprep.subr.bf16.mxu1 %v2728_v63  ;;  %2301 = vmatpush3.bf16.msra.mxu0 %v2552_v35  ;;  %v283_v35 = vld [vmem:[%s3179_s9 + $0x8] sm:$0xff] }
 0x18c   :  { %2302 = vmatprep.subr.bf16.mxu0 %v2728_v63 }
 0x18e   :  { %2321 = vmatpush3.bf16.msra.mxu1 %v2545_v32  ;;  %v2579_v32 = vld [vmem:[#allocation5 + $0x1b8] sm:$0xff]  }
 0x18f   :  { %2322 = vmatprep.subr.bf16.mxu1 %v2728_v63  ;;  %2303 = vmatpush3.bf16.msra.mxu0 %v2554_v39 }
 0x190   :  { %2328 = vmatprep.subr.bf16.mxu0 %v2728_v63 }
 0x192   :  { %2323 = vmatpush3.bf16.msra.mxu1 %v2547_v38  ;;  %2305 = vmatmul.mubr.bf16.vlgmr.msra.gmra.mrb[12].mxu0 %v926_v34  ;;  %v282_v38 = vld [vmem:[%s3179_s9] sm:$0xff] }
 0x193   :  { %2348 = vmatprep.subr.bf16.mxu1 %v2728_v63  ;;  %2329 = vmatpush3.bf16.msra.mxu0 %v2556_v42 }
 0x194   :  { %2344 = vmatprep.mubr.msk.bf16.mxu0 %vm2729_vm0, %v2728_v63  ;;  %2330 = vmatprep.subr.bf16.mxu0 %v2728_v63 }
 0x195   :  { %2325 = vmatmul.mubr.bf16.vlgmr.msra.gmra.mrb[12].mxu1 %v930_v13 }
 0x196   :  { %2349 = vmatpush3.bf16.msra.mxu1 %v2549_v62  ;;  %2364 = vmatprep.mubr.msk.bf16.mxu1 %vm2729_vm0, %v2728_v63  ;;  %v2592_v62 = vld [vmem:[#allocation5 + $0xd0] sm:$0xff]  }
 0x197   :  { %2331 = vmatpush3.bf16.msra.mxu0 %v2558_v43  ;;  %2350 = vmatprep.subr.bf16.mxu1 %v2728_v63 }
 0x198   :  { %2332 = vmatprep.subr.bf16.mxu0 %v2728_v63 }
 0x19a   :  { %2351 = vmatpush3.bf16.msra.mxu1 %v2551_v11 }
 0x19b   :  { %2333 = vmatpush3.bf16.msra.mxu0 %v2560_v44  ;;  %2352 = vmatprep.subr.bf16.mxu1 %v2728_v63 }
 0x19c   :  { %2334 = vmatprep.subr.bf16.mxu0 %v2728_v63 }
 0x19e   :  { %2353 = vmatpush3.bf16.msra.mxu1 %v2553_v3  ;;  %v2599_v3 = vld [vmem:[#allocation5 + $0xf8] sm:$0xff]  }
 0x19f   :  { %2335 = vmatpush3.bf16.msra.mxu0 %v2562_v47  ;;  %2354 = vmatprep.subr.bf16.mxu1 %v2728_v63 }
 0x1a0   :  { %2336 = vmatprep.subr.bf16.mxu0 %v2728_v63 }
 0x1a2   :  { %2355 = vmatpush3.bf16.msra.mxu1 %v2555_v6 }
 0x1a3   :  { %2337 = vmatpush3.bf16.msra.mxu0 %v2564_v50  ;;  %2356 = vmatprep.subr.bf16.mxu1 %v2728_v63 }
 0x1a4   :  { %2338 = vmatprep.subr.bf16.mxu0 %v2728_v63 }
 0x1a6   :  { %2357 = vmatpush3.bf16.msra.mxu1 %v2557_v17 }
 0x1a7   :  { %2339 = vmatpush3.bf16.msra.mxu0 %v2566_v58  ;;  %2358 = vmatprep.subr.bf16.mxu1 %v2728_v63  ;;  %v2588_v58 = vld [vmem:[#allocation5 + $0xc0] sm:$0xff]  }
 0x1a8   :  { %2340 = vmatprep.subr.bf16.mxu0 %v2728_v63 }
 0x1aa   :  { %2359 = vmatpush3.bf16.msra.mxu1 %v2559_v19 }
 0x1ab   :  { %2341 = vmatpush3.bf16.msra.mxu0 %v2568_v4  ;;  %2360 = vmatprep.subr.bf16.mxu1 %v2728_v63 }
 0x1ac   :  { %2342 = vmatprep.subr.bf16.mxu0 %v2728_v63 }
 0x1ae   :  { %2361 = vmatpush3.bf16.msra.mxu1 %v2561_v9 }
 0x1af   :  { %2343 = vmatpush3.bf16.msra.mxu0 %v2570_v14  ;;  %2362 = vmatprep.subr.bf16.mxu1 %v2728_v63 }
 0x1b0   :  { %2368 = vmatprep.subr.bf16.mxu0 %v2728_v63 }
 0x1b2   :  { %2345 = vmatmul.mubr.bf16.vlgmr.msra.gmra.mrb[16].mxu0 %v2998_v36  ;;  %2363 = vmatpush3.bf16.msra.mxu1 %v2563_v12 }
 0x1b3   :  { %2369 = vmatpush3.bf16.msra.mxu0 %v2572_v15  ;;  %2384 = vmatprep.mubr.msk.bf16.mxu0 %vm2729_vm0, %v2728_v63 }
 0x1b4   :  { %2370 = vmatprep.subr.bf16.mxu0 %v2728_v63  ;;  %2388 = vmatprep.subr.bf16.mxu1 %v2728_v63 }
 0x1b5   :  { %2365 = vmatmul.mubr.bf16.vlgmr.msra.gmra.mrb[16].mxu1 %v931_v5 }
 0x1b6   :  { %2389 = vmatpush3.bf16.msra.mxu1 %v2565_v22  ;;  %2404 = vmatprep.mubr.msk.bf16.mxu1 %vm2729_vm0, %v2728_v63  ;;  %v2589_v22 = vld [vmem:[#allocation5 + $0x1e0] sm:$0xff]  }
 0x1b7   :  { %2371 = vmatpush3.bf16.msra.mxu0 %v2574_v16  ;;  %2390 = vmatprep.subr.bf16.mxu1 %v2728_v63 }
 0x1b8   :  { %2372 = vmatprep.subr.bf16.mxu0 %v2728_v63 }
 0x1ba   :  { %2391 = vmatpush3.bf16.msra.mxu1 %v2567_v24  ;;  %v2593_v24 = vld [vmem:[#allocation5 + $0x1f0] sm:$0xff]  }
 0x1bb   :  { %2373 = vmatpush3.bf16.msra.mxu0 %v2576_v18  ;;  %2392 = vmatprep.subr.bf16.mxu1 %v2728_v63 }
 0x1bc   :  { %2374 = vmatprep.subr.bf16.mxu0 %v2728_v63 }
 0x1be   :  { %2393 = vmatpush3.bf16.msra.mxu1 %v2569_v26 }
 0x1bf   :  { %2375 = vmatpush3.bf16.msra.mxu0 %v2578_v20  ;;  %2394 = vmatprep.subr.bf16.mxu1 %v2728_v63  ;;  %v2581_v20 = vld [vmem:[#allocation5 + $0x1c0] sm:$0xff]  }
 0x1c0   :  { %2376 = vmatprep.subr.bf16.mxu0 %v2728_v63 }
 0x1c2   :  { %2395 = vmatpush3.bf16.msra.mxu1 %v2571_v27 }
 0x1c3   :  { %2377 = vmatpush3.bf16.msra.mxu0 %v2580_v10  ;;  %2396 = vmatprep.subr.bf16.mxu1 %v2728_v63 }
 0x1c4   :  { %2378 = vmatprep.subr.bf16.mxu0 %v2728_v63 }
 0x1c6   :  { %2397 = vmatpush3.bf16.msra.mxu1 %v2573_v28 }
 0x1c7   :  { %2379 = vmatpush3.bf16.msra.mxu0 %v2582_v21  ;;  %2398 = vmatprep.subr.bf16.mxu1 %v2728_v63  ;;  %v2583_v21 = vld [vmem:[#allocation5 + $0x1c8] sm:$0xff]  }
 0x1c8   :  { %2380 = vmatprep.subr.bf16.mxu0 %v2728_v63 }
 0x1ca   :  { %2399 = vmatpush3.bf16.msra.mxu1 %v2575_v29 }
 0x1cb   :  { %2381 = vmatpush3.bf16.msra.mxu0 %v2584_v23  ;;  %2400 = vmatprep.subr.bf16.mxu1 %v2728_v63  ;;  %v2591_v23 = vld [vmem:[#allocation5 + $0x1e8] sm:$0xff]  }
 0x1cc   :  { %2382 = vmatprep.subr.bf16.mxu0 %v2728_v63 }
 0x1ce   :  { %2401 = vmatpush3.bf16.msra.mxu1 %v2577_v30 }
 0x1cf   :  { %2383 = vmatpush3.bf16.msra.mxu0 %v2586_v25  ;;  %2402 = vmatprep.subr.bf16.mxu1 %v2728_v63  ;;  %v2595_v25 = vld [vmem:[#allocation5 + $0x1f8] sm:$0xff]  }
 0x1d0   :  { %2408 = vmatprep.subr.bf16.mxu0 %v2728_v63 }
 0x1d2   :  { %2403 = vmatpush3.bf16.msra.mxu1 %v2579_v32 }
 0x1d3   :  { %2428 = vmatprep.subr.bf16.mxu1 %v2728_v63 }
 0x208   :  { %v2287_v33 = vpop.f32.mrb[0].mxu1 }
 0x209   :  { %v279_v34 = vadd.f32 %v2287_v33, %v1966_v31  ;;  %v273_v36 = vpop.f32.mrb[1].mxu1 }
 0x20a   :  { %v274_v39 = vadd.f32 %v1966_v31, %v273_v36  ;;  %v2041_v36 = vld [vmem:[%s3178_s8 + $0x4] ss:$0 sm:$0xff] }
 0x20b   :  { %v285_v40 = vadd.f32 %v283_v35, %v279_v34 }
 0x20c   :  { %v284_v42 = vadd.f32 %v282_v38, %v274_v39 }
 0x20d   :  { %v3074_v45 = vmul.f32 10.0, %v285_v40 }
 0x20e   :  { %v3070_v43 = vmul.f32 10.0, %v284_v42 }
 0x20f   :  { %v293_v46 = vsel %vm289_vm1, %v3074_v45, -inf }
 0x210   :  { %v290_v44 = vsel %vm289_vm1, %v3070_v43, -inf }
 0x211   :  { %291 = vmax.xlane.f32.xlu0 %v290_v44 }
 0x215   :  { %294 = vmax.xlane.f32.xlu0 %v293_v46  ;;  %v2061_v46 = vld [vmem:[%s3178_s8 + $0x5] ss:$0 sm:$0xff] }
 0x228   :  { %v815_v47 = vpop.f32.mrb[4].mxu1 }
 0x229   :  { %v816_v48 = vadd.f32 %v815_v47, %v2983_v8  ;;  %v817_v49 = vpop.f32.mrb[5].mxu1 }
 0x22a   :  { %v818_v50 = vadd.f32 %v817_v49, %v3002_v37  ;;  %v819_v51 = vpop.f32.mrb[6].mxu1 }
 0x22b   :  { %v912_v0 = vmax.f32 %v816_v48, 0.0  ;;  %v820_v52 = vadd.f32 %v819_v51, %v2983_v8  ;;  %v821_v53 = vpop.f32.mrb[7].mxu1  ;;  %v2594_v8 = vld [vmem:[#allocation5 + $0xd8] sm:$0xff]  }
 0x22c   :  { %v913_v54 = vmax.f32 %v818_v50, 0.0  ;;  %v822_v55 = vadd.f32 %v821_v53, %v3002_v37  ;;  %v2596_v37 = vld [vmem:[#allocation5 + $0xe0] sm:$0xff]  }
 0x22d   :  { %v920_v56 = vmax.f32 %v820_v52, 0.0 }
 0x22e   :  { %v921_v57 = vmax.f32 %v822_v55, 0.0 }
 0x22f   :  { %v928_v59 = vpack.c.bf16 %v920_v56, %v912_v0 }
 0x230   :  { %v929_v60 = vpack.c.bf16 %v921_v57, %v913_v54 }
 0x231   :  { %2385 = vmatmul.mubr.bf16.vlgmr.msra.gmra.mrb[20].mxu0 %v928_v59 }
 0x232   :  { %2409 = vmatpush3.bf16.msra.mxu0 %v2588_v58  ;;  %2424 = vmatprep.mubr.msk.bf16.mxu0 %vm2729_vm0, %v2728_v63 }
 0x233   :  { %2410 = vmatprep.subr.bf16.mxu0 %v2728_v63 }
 0x236   :  { %2411 = vmatpush3.bf16.msra.mxu0 %v2590_v61  ;;  %v2031_v61 = vld [vmem:[%s3178_s8] ss:$0 sm:$0xff] }
 0x237   :  { %2412 = vmatprep.subr.bf16.mxu0 %v2728_v63 }
 0x23a   :  { %2413 = vmatpush3.bf16.msra.mxu0 %v2592_v62 }
 0x23b   :  { %2414 = vmatprep.subr.bf16.mxu0 %v2728_v63 }
 0x23e   :  { %2415 = vmatpush3.bf16.msra.mxu0 %v2594_v8 }
 0x23f   :  { %2416 = vmatprep.subr.bf16.mxu0 %v2728_v63 }
 0x242   :  { %2417 = vmatpush3.bf16.msra.mxu0 %v2596_v37  ;;  %v2051_v37 = vld [vmem:[%s3178_s8 + $0x1] ss:$0 sm:$0xff] }
 0x243   :  { %2418 = vmatprep.subr.bf16.mxu0 %v2728_v63 }
 0x246   :  { %2419 = vmatpush3.bf16.msra.mxu0 %v2597_v1 }
 0x247   :  { %2420 = vmatprep.subr.bf16.mxu0 %v2728_v63 }
 0x248   :  { %v901_v13 = vpop.f32.mrb[8].mxu1 }
 0x249   :  { %v902_v4 = vadd.f32 %v901_v13, %v3008_v41  ;;  %v903_v5 = vpop.f32.mrb[9].mxu1 }
 0x24a   :  { %v904_v11 = vadd.f32 %v903_v5, %v3026_v7  ;;  %v905_v14 = vpop.f32.mrb[10].mxu1  ;;  %2421 = vmatpush3.bf16.msra.mxu0 %v2598_v2 }
 0x24b   :  { %v916_v15 = vmax.f32 %v902_v4, 0.0  ;;  %v906_v6 = vadd.f32 %v905_v14, %v3008_v41  ;;  %v907_v16 = vpop.f32.mrb[11].mxu1  ;;  %2422 = vmatprep.subr.bf16.mxu0 %v2728_v63  ;;  %v2585_v41 = vld [vmem:[#allocation5 + $0x1d0] sm:$0xff]  }
 0x24c   :  { %v917_v17 = vmax.f32 %v904_v11, 0.0  ;;  %v908_v18 = vadd.f32 %v907_v16, %v3026_v7  ;;  %v2587_v7 = vld [vmem:[#allocation5 + $0x1d8] sm:$0xff]   ;;  %v1160_v16 = vld [vmem:[#allocation7] sm:$0xff] }
 0x24d   :  { %v924_v19 = vmax.f32 %v906_v6, 0.0 }
 0x24e   :  { %v925_v9 = vmax.f32 %v908_v18, 0.0  ;;  %2423 = vmatpush3.bf16.msra.mxu0 %v2599_v3  ;;  %v1416_v18 = vld [vmem:[#allocation7 + $0x18] sm:$0xff] }
 0x24f   :  { %v932_v10 = vpack.c.bf16 %v924_v19, %v916_v15 }
 0x250   :  { %v933_v12 = vpack.c.bf16 %v925_v9, %v917_v17  ;;  %v1161_v17 = vld [vmem:[#allocation7 + $0x8] sm:$0xff] }
 0x251   :  { %2405 = vmatmul.mubr.bf16.vlgmr.msra.gmra.mrb[20].mxu1 %v932_v10  ;;  %2425 = vmatmul.mubr.bf16.vlgmr.msra.gmra.mrb[24].mxu0 %v929_v60  ;;  %v1415_v10 = vld [vmem:[#allocation7 + $0x10] sm:$0xff] }
 0x252   :  { %2429 = vmatpush3.bf16.msra.mxu1 %v2581_v20  ;;  %2444 = vmatprep.mubr.msk.bf16.mxu1 %vm2729_vm0, %v2728_v63 }
 0x253   :  { %2430 = vmatprep.subr.bf16.mxu1 %v2728_v63 }
 0x256   :  { %2431 = vmatpush3.bf16.msra.mxu1 %v2583_v21 }
 0x257   :  { %2432 = vmatprep.subr.bf16.mxu1 %v2728_v63 }
 0x25a   :  { %2433 = vmatpush3.bf16.msra.mxu1 %v2585_v41 }
 0x25b   :  { %2434 = vmatprep.subr.bf16.mxu1 %v2728_v63 }
 0x25e   :  { %2435 = vmatpush3.bf16.msra.mxu1 %v2587_v7 }
 0x25f   :  { %2436 = vmatprep.subr.bf16.mxu1 %v2728_v63 }
 0x262   :  { %2437 = vmatpush3.bf16.msra.mxu1 %v2589_v22 }
 0x263   :  { %2438 = vmatprep.subr.bf16.mxu1 %v2728_v63 }
 0x265   :  { %v1039_v58 = vpop.f32.mrb[12].mxu0 }
 0x266   :  { %2439 = vmatpush3.bf16.msra.mxu1 %v2591_v23  ;;  %v2306_v59 = vpop.f32.mrb[13].mxu0  ;;  %v1040_v5 = vadd.f32 %v2031_v61, %v1039_v58  ;;  %v2101_v58 = vld [vmem:[%s3178_s8 + $0x7] ss:$0 sm:$0xff] }
 0x267   :  { %2440 = vmatprep.subr.bf16.mxu1 %v2728_v63  ;;  %v1042_v60 = vpop.f32.mrb[14].mxu0 }
 0x268   :  { %v1153_v35 = vpop.f32.mrb[12].mxu1  ;;  %v2307_v62 = vpop.f32.mrb[15].mxu0  ;;  %v1043_v11 = vadd.f32 %v2031_v61, %v1042_v60 }
 0x269   :  { %v2326_v38 = vpop.f32.mrb[13].mxu1  ;;  %v1154_v39 = vadd.f32 %v2041_v36, %v1153_v35 }
 0x26a   :  { %2441 = vmatpush3.bf16.msra.mxu1 %v2593_v24  ;;  %v1156_v40 = vpop.f32.mrb[14].mxu1 }
 0x26b   :  { %2442 = vmatprep.subr.bf16.mxu1 %v2728_v63  ;;  %v1157_v42 = vadd.f32 %v2041_v36, %v1156_v40  ;;  %v1162_v44 = vmul.f32 0.5, %v1154_v39 }
 0x26d   :  { %v1164_v48 = vmul.f32 1.442695, %v1162_v44 }
 0x26e   :  { %2443 = vmatpush3.bf16.msra.mxu1 %v2595_v25 }
 0x271   :  { %2445 = vmatmul.mubr.bf16.vlgmr.msra.gmra.mrb[24].mxu1 %v933_v12 }
 0x285   :  { %v1293_v1 = vpop.f32.mrb[16].mxu0 }
 0x286   :  { %v2346_v13 = vpop.f32.mrb[17].mxu0  ;;  %v1294_v3 = vadd.f32 %v2051_v37, %v1293_v1 }
 0x287   :  { %v1296_v14 = vpop.f32.mrb[18].mxu0 }
 0x288   :  { %v1297_v15 = vadd.f32 %v2051_v37, %v1296_v14  ;;  %v2347_v6 = vpop.f32.mrb[19].mxu0 }
 0x289   :  { %v2091_v6 = vld [vmem:[%s3178_s8 + $0x3] ss:$0 sm:$0xff] }
 0x29e   :  { %v292_v26 = vpop.xlane.xlu0 %291 }
 0x29f   :  { %v296_v27 = vsub.f32 %v3070_v43, %v292_v26  ;;  %v2327_v43 = vpop.f32.mrb[15].mxu1 }
 0x2a0   :  { %v1407_v47 = vpop.f32.mrb[16].mxu1 }
 0x2a1   :  { %v298_v28 = vmul.f32 1.442695, %v296_v27  ;;  %v1408_v49 = vadd.f32 %v2061_v46, %v1407_v47  ;;  %v2366_v50 = vpop.f32.mrb[17].mxu1  ;;  %v1668_v47 = vld [vmem:[#allocation7 + $0x20] sm:$0xff] }
 0x2a2   :  { %v295_v29 = vpop.xlane.xlu0 %294  ;;  %v1410_v0 = vpop.f32.mrb[18].mxu1  ;;  %v1669_v50 = vld [vmem:[#allocation7 + $0x28] sm:$0xff] }
 0x2a3   :  { %2600 = vpow2.f32 %v298_v28  ;;  %v297_v30 = vsub.f32 %v3074_v45, %v295_v29  ;;  %v1163_v45 = vmul.f32 0.5, %v1157_v42  ;;  %v1417_v52 = vmul.f32 0.5, %v1408_v49  ;;  %v2367_v54 = vpop.f32.mrb[19].mxu1  ;;  %v2081_v28 = vld [vmem:[%s3178_s8 + $0x6] ss:$0 sm:$0xff] }
 0x2a4   :  { %v1411_v53 = vadd.f32 %v2061_v46, %v1410_v0  ;;  %v2071_v46 = vld [vmem:[%s3178_s8 + $0x2] ss:$0 sm:$0xff]  ;;  %s2733_s8 = smov [#allocation8]  }
 0x2a5   :  { %v300_v31 = vmul.f32 1.442695, %v297_v30  ;;  %v1166_v51 = vmul.f32 1.442695, %v1163_v45  ;;  %v1419_v55 = vmul.f32 1.442695, %v1417_v52 }
 0x2a6   :  { %v1418_v56 = vmul.f32 0.5, %v1411_v53  ;;  %s1952_s18 = sshll.u32 %s2733_s8, 4  ;;  %s1953_s18 = int_to_ptr.vmem [resolvable:$true] %s1952_s18 }
 0x2a7   :  { %2602 = vpow2.f32 %v300_v31  ;;  %s2690_s3 = scalar_lea.vmem %s1953_s18, 256  ;;  %p2695_p11 = scmp.lt.s32.totalorder %s1953_s18, %s1953_s18 }
 0x2a8   :  { %2604 = vpow2.f32 %v1164_v48  ;;  %v1421_v57 = vmul.f32 1.442695, %v1418_v56  ;;  %p2691_p10 = scmp.ne.s32.totalorder %s1953_s18, %s2690_s3  ;;  %p2696_p12 = scmp.lt.s32.totalorder %s2690_s3, %s2690_s3 }
 0x2a9   :  { %2606 = vpow2.f32 %v1166_v51 }
 0x2aa   :  { %2608 = vpow2.f32 %v1419_v55  ;;  %p2697_p13 = por %p2696_p12, %p2695_p11 }
 0x2ab   :  { %2610 = vpow2.f32 %v1421_v57 }
 0x2ac   :  { %p2698_p0 = pnand %p2697_p13, %p2691_p10 }
 0x2ad   :  { %v3106_v32 = vpop.eup %2600 }
 0x2ae   :  { %v302_v33 = vsel %vm289_vm1, %v3106_v32, 0.0 }
 0x2af   :  { %303 = vadd.xlane.f32.xlu1 %v302_v33 }
 0x2b1   :  { %v3110_v34 = vpop.eup %2602 }
 0x2b2   :  { %v305_v63 = vsel %vm289_vm1, %v3110_v34, 0.0  ;;  %v2605_v8 = vpop.eup %2604 }
 0x2b3   :  { %306 = vadd.xlane.f32.xlu1 %v305_v63  ;;  %v2607_v2 = vpop.eup %2606  ;;  %v1168_v20 = vmul.f32 %v2605_v8, %v1160_v16  ;;  %v2731_v16 = vmov 1  }
 0x2b4   :  { %v2609_v4 = vpop.eup %2608  ;;  %v1169_v9 = vmul.f32 %v2607_v2, %v1161_v17 }
 0x2b5   :  { %v2611_v19 = vpop.eup %2610  ;;  %v1423_v21 = vmul.f32 %v2609_v4, %v1415_v10  ;;  %v3126_v41 = vadd.f32 %v1168_v20, %v1040_v5 }
 0x2b6   :  { %v1424_v12 = vmul.f32 %v2611_v19, %v1416_v18  ;;  %v3128_v7 = vadd.f32 %v1169_v9, %v1043_v11  ;;  %v1922_v19 = vld [vmem:[#allocation7 + $0x38] sm:$0xff] }
 0x2b7   :  { %v3132_v23 = vadd.f32 %v1423_v21, %v1294_v3 }
 0x2b8   :  { %v3130_v22 = vadd.f32 %v1424_v12, %v1297_v15  ;;  %v2730_v15 = vmov 3   ;;  %v2732_v12 = vmov 2  }
 0x304   :  { %v1546_v24 = vpop.f32.mrb[20].mxu0 }
 0x305   :  { %v2386_v25 = vpop.f32.mrb[21].mxu0  ;;  %v1547_v48 = vadd.f32 %v2071_v46, %v1546_v24 }
 0x306   :  { %v1549_v26 = vpop.f32.mrb[22].mxu0 }
 0x307   :  { %v2387_v27 = vpop.f32.mrb[23].mxu0  ;;  %v1550_v51 = vadd.f32 %v2071_v46, %v1549_v26 }
 0x324   :  { %v1660_v29 = vpop.f32.mrb[20].mxu1  ;;  %v1799_v30 = vpop.f32.mrb[24].mxu0 }
 0x325   :  { %v1661_v31 = vadd.f32 %v2081_v28, %v1660_v29  ;;  %v2406_v33 = vpop.f32.mrb[21].mxu1  ;;  %v2426_v63 = vpop.f32.mrb[25].mxu0  ;;  %v1800_v17 = vadd.f32 %v2091_v6, %v1799_v30 }
 0x326   :  { %v1663_v35 = vpop.f32.mrb[22].mxu1  ;;  %v1802_v36 = vpop.f32.mrb[26].mxu0 }
 0x327   :  { %v1670_v38 = vmul.f32 0.5, %v1661_v31  ;;  %v1664_v39 = vadd.f32 %v2081_v28, %v1663_v35  ;;  %v2407_v40 = vpop.f32.mrb[23].mxu1  ;;  %v2427_v42 = vpop.f32.mrb[27].mxu0  ;;  %v1803_v20 = vadd.f32 %v2091_v6, %v1802_v36 }
 0x329   :  { %v1672_v43 = vmul.f32 1.442695, %v1670_v38  ;;  %v1671_v44 = vmul.f32 0.5, %v1664_v39 }
 0x32b   :  { %2612 = vpow2.f32 %v1672_v43  ;;  %v1674_v45 = vmul.f32 1.442695, %v1671_v44 }
 0x32d   :  { %2614 = vpow2.f32 %v1674_v45 }
 0x335   :  { %v2613_v49 = vpop.eup %2612 }
 0x336   :  { %v1676_v0 = vmul.f32 %v2613_v49, %v1668_v47 }
 0x337   :  { %v2615_v52 = vpop.eup %2614 }
 0x338   :  { %v1677_v53 = vmul.f32 %v2615_v52, %v1669_v50  ;;  %v3140_v54 = vadd.f32 %v1676_v0, %v1547_v48 }
 0x33a   :  { %v1679_v55 = vadd.f32 %v1677_v53, %v1550_v51 }
 0x33c   :  { %v304_v56 = vpop.xlane.xlu1 %303 }
 0x33d   :  { %2616 = vrcp.f32 %v304_v56 }
 0x340   :  { %v307_v57 = vpop.xlane.xlu1 %306 }
 0x341   :  { %2618 = vrcp.f32 %v307_v57 }
 0x344   :  { %v1913_v59 = vpop.f32.mrb[24].mxu1 }
 0x345   :  { %v1914_v60 = vadd.f32 %v2101_v58, %v1913_v59  ;;  %v2446_v61 = vpop.f32.mrb[25].mxu1 }
 0x346   :  { %v1916_v62 = vpop.f32.mrb[26].mxu1 }
 0x347   :  { %v2617_v8 = vpop.eup %2616  ;;  %v1923_v37 = vmul.f32 0.5, %v1914_v60  ;;  %v1917_v1 = vadd.f32 %v2101_v58, %v1916_v62  ;;  %v2447_v2 = vpop.f32.mrb[27].mxu1 }
 0x348   :  { %v309_v13 = vmul.f32 %v2617_v8, %v3106_v32  ;;  %v1921_v32 = vld [vmem:[#allocation7 + $0x30] sm:$0xff] }
 0x349   :  { %v1925_v4 = vmul.f32 1.442695, %v1923_v37  ;;  %v1924_v5 = vmul.f32 0.5, %v1917_v1 }
 0x34a   :  { %1174 = vperm.xlu0 %2528, %v309_v13  }
 0x34b   :  { %v2619_v11 = vpop.eup %2618  ;;  %2620 = vpow2.f32 %v1925_v4  ;;  %v1927_v14 = vmul.f32 1.442695, %v1924_v5 }
 0x34c   :  { %v311_v3 = vmul.f32 %v2619_v11, %v3110_v34 }
 0x34d   :  { %2622 = vpow2.f32 %v1927_v14 }
 0x34e   :  { %1179 = vperm.xlu1 %2529, %v311_v3   ;;  %2535 = vset.pattern.permute.xlu0 %v2730_v15 }
 0x352   :  { %2530 = vset.pattern.permute.xlu1 %v2731_v16 }
 0x353   :  { %1432 = vperm.xlu1 %2530, %v311_v3  }
 0x355   :  { %v2621_v18 = vpop.eup %2620 }
 0x356   :  { %v1929_v9 = vmul.f32 %v2621_v18, %v1921_v32 }
 0x357   :  { %v2623_v10 = vpop.eup %2622  ;;  %2531 = vset.pattern.permute.xlu1 %v2732_v12 }
 0x358   :  { %1685 = vperm.xlu1 %2531, %v311_v3   ;;  %v1931_v34 = vadd.f32 %v1929_v9, %v1800_v17  ;;  %v1930_v21 = vmul.f32 %v2623_v10, %v1922_v19 }
 0x35a   :  { %v1932_v24 = vadd.f32 %v1930_v21, %v1803_v20 }
 0x35c   :  { %2532 = vset.pattern.permute.xlu1 %v2731_v16 }
 0x35d   :  { %1428 = vperm.xlu1 %2532, %v309_v13  }
 0x361   :  { %2533 = vset.pattern.permute.xlu1 %v2732_v12 }
 0x362   :  { %1681 = vperm.xlu1 %2533, %v309_v13  }
 0x366   :  { %2534 = vset.pattern.permute.xlu1 %v2730_v15 }
 0x367   :  { %1934 = vperm.xlu1 %2534, %v309_v13  }
 0x36b   :  { %1938 = vperm.xlu1 %2534, %v311_v3  }
 0x3c9   :  { %v1175_v33 = vpop.permute.xlu0 %1174 }
 0x3ca   :  { %v1182_v36 = vmul.f32 %v1175_v33, %v3126_v41 }
 0x3cd   :  { %v1180_v25 = vpop.permute.xlu1 %1179 }
 0x3ce   :  { %v1183_v27 = vmul.f32 %v1180_v25, %v3128_v7 }
 0x3d2   :  { %v1433_v26 = vpop.permute.xlu1 %1432 }
 0x3d3   :  { %v1436_v28 = vmul.f32 %v1433_v26, %v3130_v22 }
 0x3d5   :  { %v1438_v29 = vadd.f32 %v1436_v28, %v1183_v27 }
 0x3d7   :  { %v1686_v30 = vpop.permute.xlu1 %1685 }
 0x3d8   :  { %v1689_v31 = vmul.f32 %v1686_v30, %v1679_v55 }
 0x3da   :  { %v1691_v63 = vadd.f32 %v1689_v31, %v1438_v29 }
 0x3dc   :  { %v1429_v35 = vpop.permute.xlu1 %1428 }
 0x3dd   :  { %v1435_v38 = vmul.f32 %v1429_v35, %v3132_v23 }
 0x3df   :  { %v1437_v39 = vadd.f32 %v1435_v38, %v1182_v36 }
 0x3e1   :  { %v1682_v40 = vpop.permute.xlu1 %1681 }
 0x3e2   :  { %v1688_v42 = vmul.f32 %v1682_v40, %v3140_v54 }
 0x3e4   :  { %v1690_v43 = vadd.f32 %v1688_v42, %v1437_v39 }
 0x3e6   :  { %v1935_v44 = vpop.permute.xlu1 %1934 }
 0x3e7   :  { %v1941_v45 = vmul.f32 %v1935_v44, %v1931_v34 }
 0x3e9   :  { %v1943_v7 = vadd.f32 %v1941_v45, %v1690_v43 }
 0x3ea   :  { %v1939_v46 = vpop.permute.xlu1 %1938 }
 0x3eb   :  { %1945 = vst [vmem:[#allocation8] sm:$0xff] %v1943_v7  ;;  %v1942_v22 = vmul.f32 %v1939_v46, %v1932_v24 }
 0x3ed   :  { %v1944_v47 = vadd.f32 %v1942_v22, %v1691_v63 }
 0x3ef   :  { %1946 = vst [vmem:[#allocation8 + $0x8] sm:$0xff] %v1944_v47 }
 0x3f0   :  { %2701 = shalt.err (!%p2698_p0)
}
 0x3f1   :  { %s2702_s24 = scalar_lea.hbm %s3181_s11, 256 }
 0x3f2   :  { %p2703_p1 = scmp.ne.s32.totalorder %s3181_s11, %s2702_s24  ;;  %p2706_p2 = scmp.lt.u32.totalorder %s2702_s24, %s3181_s11 }
 0x3f4   :  { %p2708_p3 = pnand %p2706_p2, %p2703_p1 }
 0x3f6   :  { %2711 = shalt.err (!%p2708_p3)
}
 0x3f7   :  { %1958 = dma.vmem_to_hbm [thread:$0]  %s1953_s18, 256, %s3181_s11, [#allocation4], %s2725_s5, %s2725_s5, %s2726_s13  }
 0x3f8   :  { %2716 = dma.done.wait [#allocation4], 256  }
 0x3f9   :  { %2717 = vsyncadd [#allocation4], 4294967040 }
 0x3fa   :  { %1962 = vsyncpa [#allocation3], 1 }
 0x3fb   :  { %1963 = vsyncpa [#allocation6], 1 }
 0x3fc   :  { %1964 = vsyncpa [#allocation4], 1 }

</bundles_post_ra>
